<compile_context>
chip_gen: v7x
topology: tpu7x:2x2x1
jax: 0.10.0
libtpu: 0.0.40
codegen_flags: <defaults>
</compile_context>

<pallas_src>
import jax
import jax.numpy as jnp
from jax.experimental import pallas as pl
from jax.experimental.pallas import tpu as pltpu

IN_FEATURES = 28 * 28      # 784 (equals full last dim of x -> legal block extent)
HIDDEN = 1024
OUT_FEATURES = 10
OUT_PAD = 128              # lane-dense output width
TILE_M_MAX = 512           # batch tile (sweepable 256..1024)


def _round_up(x, m):
    return ((x + m - 1) // m) * m


def _choose_tile_m(n, tile_m_max):
    """Pick the batch tile: multiple of 8, MXU-friendly, >=2 grid steps when big."""
    tile_m_max = max(8, _round_up(tile_m_max, 8))
    small = _round_up(n, 8)
    if n <= 256 or tile_m_max <= 256:
        # Small batch (or caller-capped tile): single/few tiles, sublane-aligned.
        return min(small, tile_m_max)
    # Large batch: tile is a multiple of 256 (fills a 256x256 MXU pass on
    # v6e/v7x) and the grid has >= 2 steps so v7x's two TensorCores both work.
    half = _round_up((n + 1) // 2, 256)
    return min(tile_m_max, half)


def netfull_kernel(x_ref, w1_ref, b1_ref, w2_ref, b2_ref, o_ref):
    # x_ref:  (tile_m, 784) f32      w1_ref: (784, 1024) bf16   b1_ref: (1, 1024) f32
    # w2_ref: (1024, 128) bf16       b2_ref: (1, 128) f32       o_ref:  (tile_m, 128) f32
    x = x_ref[...].astype(jnp.bfloat16)          # in-kernel cast (VPU, hidden under MXU)

    # fc1: bf16 MXU matmul with f32 accumulation, then bias + tanh in f32.
    h = jnp.dot(x, w1_ref[...], preferred_element_type=jnp.float32) + b1_ref[...]
    h = jnp.tanh(h)

    # fc2: bf16 MXU matmul with f32 accumulation, bias in f32.
    logits = jnp.dot(h.astype(jnp.bfloat16), w2_ref[...],
                     preferred_element_type=jnp.float32) + b2_ref[...]

    # log_softmax over the first OUT_FEATURES lanes only (padding masked out).
    col = jax.lax.broadcasted_iota(jnp.int32, logits.shape, 1)
    valid = col < OUT_FEATURES
    logits = jnp.where(valid, logits, jnp.float32(-1e30))
    m = jnp.max(logits, axis=1, keepdims=True)
    shifted = logits - m
    expv = jnp.where(valid, jnp.exp(shifted), 0.0)
    lse = jnp.log(jnp.sum(expv, axis=1, keepdims=True))
    o_ref[...] = (shifted - lse).astype(o_ref.dtype)


def prepare_params(w1, b1, w2, b2):
    """One-time weight prep (cast / lane-pad). Do NOT call per forward pass."""
    w1_bf = w1.astype(jnp.bfloat16)                                  # (784, 1024)
    b1_2d = b1.reshape(1, HIDDEN).astype(jnp.float32)                # (1, 1024)
    w2_p = jnp.zeros((HIDDEN, OUT_PAD), dtype=jnp.bfloat16)
    w2_p = w2_p.at[:, :OUT_FEATURES].set(w2.astype(jnp.bfloat16))    # (1024, 128)
    b2_p = jnp.zeros((1, OUT_PAD), dtype=jnp.float32)
    b2_p = b2_p.at[0, :OUT_FEATURES].set(b2.astype(jnp.float32))     # (1, 128)
    return w1_bf, b1_2d, w2_p, b2_p


def netfull_forward(x_nchw, params, *, tile_m_max=TILE_M_MAX):
    """x_nchw: (N, 1, 28, 28) f32; params: output of prepare_params()."""
    w1_bf, b1_2d, w2_p, b2_p = params
    n = x_nchw.shape[0]
    x2d = x_nchw.reshape(n, IN_FEATURES).astype(jnp.float32)

    tile_m = _choose_tile_m(n, tile_m_max)
    n_pad = _round_up(n, tile_m)
    if n_pad != n:
        # Only the ragged last tile gets padded (no full-batch copy when aligned).
        x2d = jnp.pad(x2d, ((0, n_pad - n), (0, 0)))
    grid = (n_pad // tile_m,)

    cost = pl.CostEstimate(
        flops=2 * n_pad * IN_FEATURES * HIDDEN + 2 * n_pad * HIDDEN * OUT_PAD,
        transcendentals=n_pad * (HIDDEN + OUT_PAD + 1),   # tanh + softmax exp + log
        bytes_accessed=(n_pad * IN_FEATURES * 4            # x (f32, unpadded lanes)
                        + w1_bf.size * 2 + b1_2d.size * 4  # resident weights
                        + w2_p.size * 2 + b2_p.size * 4
                        + n_pad * OUT_PAD * 4),            # output writeback
    )

    out = pl.pallas_call(
        netfull_kernel,
        out_shape=jax.ShapeDtypeStruct((n_pad, OUT_PAD), jnp.float32),
        grid_spec=pltpu.PrefetchScalarGridSpec(
            num_scalar_prefetch=0,
            grid=grid,
            in_specs=[
                pl.BlockSpec((tile_m, IN_FEATURES), lambda i: (i, 0)),   # x streams
                pl.BlockSpec((IN_FEATURES, HIDDEN), lambda i: (0, 0)),   # w1 resident
                pl.BlockSpec((1, HIDDEN), lambda i: (0, 0)),             # b1 resident
                pl.BlockSpec((HIDDEN, OUT_PAD), lambda i: (0, 0)),       # w2 resident
                pl.BlockSpec((1, OUT_PAD), lambda i: (0, 0)),            # b2 resident
            ],
            out_specs=pl.BlockSpec((tile_m, OUT_PAD), lambda i: (i, 0)),
        ),
        compiler_params=pltpu.CompilerParams(
            dimension_semantics=("parallel",),
            vmem_limit_bytes=32 * 1024 * 1024,
        ),
        cost_estimate=cost,
    )(x2d, w1_bf, b1_2d, w2_p, b2_p)

    # Strip batch padding and the padded output lanes.
    return out[:n, :OUT_FEATURES]


def reference_forward(x_nchw, w1, b1, w2, b2):
    n = x_nchw.shape[0]
    x2d = x_nchw.reshape(n, IN_FEATURES)
    h = jnp.tanh(x2d @ w1 + b1)
    logits = h @ w2 + b2
    return jax.nn.log_softmax(logits, axis=1)


if __name__ == "__main__":
    key = jax.random.PRNGKey(0)
    k_x, k_w1, k_b1, k_w2, k_b2 = jax.random.split(key, 5)

    # Small MNIST-like batch; 20 is deliberately NOT a multiple of 8 so the
    # remainder-padding path is exercised.
    N = 20
    x = jax.random.normal(k_x, (N, 1, 28, 28), dtype=jnp.float32)

    # Synthetic parameters (shapes from nn.Linear(784,1024)/(1024,10)),
    # stored as (in_features, out_features).
    w1 = jax.random.normal(k_w1, (IN_FEATURES, HIDDEN), dtype=jnp.float32) * 0.02
    b1 = jax.random.normal(k_b1, (HIDDEN,), dtype=jnp.float32) * 0.02
    w2 = jax.random.normal(k_w2, (HIDDEN, OUT_FEATURES), dtype=jnp.float32) * 0.02
    b2 = jax.random.normal(k_b2, (OUT_FEATURES,), dtype=jnp.float32) * 0.02

    # One-time weight prep (hoisted out of the per-call path).
    params = prepare_params(w1, b1, w2, b2)

    ref = jax.block_until_ready(reference_forward(x, w1, b1, w2, b2))

    # Default tiling (single tile for this small batch).
    out = jax.block_until_ready(netfull_forward(x, params))
    assert out.shape == (N, OUT_FEATURES)
    assert jnp.allclose(out, ref, rtol=2e-2, atol=2e-2), "mismatch vs JAX reference (default tile)"

    # Tiny tile -> multi-step grid, exercises the pipelined / parallel path.
    out_multi = jax.block_until_ready(netfull_forward(x, params, tile_m_max=8))
    assert out_multi.shape == (N, OUT_FEATURES)
    assert jnp.allclose(out_multi, ref, rtol=2e-2, atol=2e-2), "mismatch vs JAX reference (tiled)"

    # Larger batch -> exercises the >=2-grid-step (megacore) tile selection
    # and the ragged-last-tile jnp.pad path.
    N2 = 500
    x2 = jax.random.normal(k_x, (N2, 1, 28, 28), dtype=jnp.float32)
    ref2 = jax.block_until_ready(reference_forward(x2, w1, b1, w2, b2))
    out2 = jax.block_until_ready(netfull_forward(x2, params))
    assert out2.shape == (N2, OUT_FEATURES)
    assert jnp.allclose(out2, ref2, rtol=2e-2, atol=2e-2), "mismatch vs JAX reference (large batch)"

    print("KERNEL_OK")
</pallas_src>

<mosaic_0001>
module attributes {stable_mosaic.version = 11 : i64} {
  func.func @netfull_kernel(%arg0: i32, %arg1: memref<24x784xf32, #tpu.memory_space<vmem>>, %arg2: memref<784x1024xbf16, #tpu.memory_space<vmem>>, %arg3: memref<1x1024xf32, #tpu.memory_space<vmem>>, %arg4: memref<1024x128xbf16, #tpu.memory_space<vmem>>, %arg5: memref<1x128xf32, #tpu.memory_space<vmem>>, %arg6: memref<24x128xf32, #tpu.memory_space<vmem>>) attributes {dimension_semantics = [#tpu.dimension_semantics<parallel>], iteration_bounds = array<i64: 1>, scalar_prefetch = 0 : i64, scratch_operands = 0 : i64, tpu.core_type = #tpu.core_type<tc>, window_params = [{transform_indices = @transform_0, window_bounds = array<i64: 24, 784>}, {pipeline_mode = #tpu.pipeline_mode<synchronous>, transform_indices = @transform_1, window_bounds = array<i64: 784, 1024>}, {pipeline_mode = #tpu.pipeline_mode<synchronous>, transform_indices = @transform_2, window_bounds = array<i64: 1, 1024>}, {pipeline_mode = #tpu.pipeline_mode<synchronous>, transform_indices = @transform_3, window_bounds = array<i64: 1024, 128>}, {pipeline_mode = #tpu.pipeline_mode<synchronous>, transform_indices = @transform_4, window_bounds = array<i64: 1, 128>}, {transform_indices = @transform_5, window_bounds = array<i64: 24, 128>}]} {
    %c0 = arith.constant 0 : index
    %c0_0 = arith.constant 0 : index
    %0 = vector.load %arg1[%c0, %c0_0] : memref<24x784xf32, #tpu.memory_space<vmem>>, vector<24x784xf32>
    %1 = arith.truncf %0 : vector<24x784xf32> to vector<24x784xbf16>
    %c0_1 = arith.constant 0 : index
    %c0_2 = arith.constant 0 : index
    %2 = vector.load %arg2[%c0_1, %c0_2] : memref<784x1024xbf16, #tpu.memory_space<vmem>>, vector<784x1024xbf16>
    %cst = arith.constant dense<0.000000e+00> : vector<24x1024xf32>
    %3 = tpu.matmul %1, %2, %cst {dimension_numbers = #tpu.dot_dimension_numbers<[1], [0], [0], [1], [0, 0, 1, 1], [], []>} : vector<24x784xbf16>, vector<784x1024xbf16>, vector<24x1024xf32> -> vector<24x1024xf32>
    %c0_3 = arith.constant 0 : index
    %c0_4 = arith.constant 0 : index
    %4 = vector.load %arg3[%c0_3, %c0_4] : memref<1x1024xf32, #tpu.memory_space<vmem>>, vector<1x1024xf32>
    %5 = vector.broadcast %4 : vector<1x1024xf32> to vector<24x1024xf32>
    %6 = arith.addf %3, %5 : vector<24x1024xf32>
    %7 = math.tanh %6 : vector<24x1024xf32>
    %8 = arith.truncf %7 : vector<24x1024xf32> to vector<24x1024xbf16>
    %c0_5 = arith.constant 0 : index
    %c0_6 = arith.constant 0 : index
    %9 = vector.load %arg4[%c0_5, %c0_6] : memref<1024x128xbf16, #tpu.memory_space<vmem>>, vector<1024x128xbf16>
    %cst_7 = arith.constant dense<0.000000e+00> : vector<24x128xf32>
    %10 = tpu.matmul %8, %9, %cst_7 {dimension_numbers = #tpu.dot_dimension_numbers<[1], [0], [0], [1], [0, 0, 1, 1], [], []>} : vector<24x1024xbf16>, vector<1024x128xbf16>, vector<24x128xf32> -> vector<24x128xf32>
    %c0_8 = arith.constant 0 : index
    %c0_9 = arith.constant 0 : index
    %11 = vector.load %arg5[%c0_8, %c0_9] : memref<1x128xf32, #tpu.memory_space<vmem>>, vector<1x128xf32>
    %12 = vector.broadcast %11 : vector<1x128xf32> to vector<24x128xf32>
    %13 = arith.addf %10, %12 : vector<24x128xf32>
    %14 = tpu.iota {dimensions = array<i32: 1>} : vector<24x128xi32>
    %c10_i32 = arith.constant 10 : i32
    %15 = vector.broadcast %c10_i32 : i32 to vector<24x128xi32>
    %16 = arith.cmpi slt, %14, %15 : vector<24x128xi32>
    %cst_10 = arith.constant -1.000000e+30 : f32
    %17 = vector.broadcast %cst_10 : f32 to vector<24x128xf32>
    %18 = arith.select %16, %13, %17 : vector<24x128xi1>, vector<24x128xf32>
    %cst_11 = arith.constant dense<0xFF800000> : vector<24xf32>
    %19 = vector.multi_reduction <maximumf>, %18, %cst_11 [1] : vector<24x128xf32> to vector<24xf32>
    %20 = vector.shape_cast %19 : vector<24xf32> to vector<24x1xf32>
    %21 = vector.broadcast %20 : vector<24x1xf32> to vector<24x128xf32>
    %22 = arith.subf %18, %21 : vector<24x128xf32>
    %23 = math.exp %22 : vector<24x128xf32>
    %cst_12 = arith.constant 0.000000e+00 : f32
    %24 = vector.broadcast %cst_12 : f32 to vector<24x128xf32>
    %25 = arith.select %16, %23, %24 : vector<24x128xi1>, vector<24x128xf32>
    %cst_13 = arith.constant dense<0.000000e+00> : vector<24xf32>
    %26 = vector.multi_reduction <add>, %25, %cst_13 [1] : vector<24x128xf32> to vector<24xf32>
    %27 = vector.shape_cast %26 : vector<24xf32> to vector<24x1xf32>
    %28 = math.log %27 : vector<24x1xf32>
    %29 = vector.broadcast %28 : vector<24x1xf32> to vector<24x128xf32>
    %30 = arith.subf %22, %29 : vector<24x128xf32>
    %c0_14 = arith.constant 0 : index
    %c0_15 = arith.constant 0 : index
    %31 = vector.load %arg6[%c0_14, %c0_15] : memref<24x128xf32, #tpu.memory_space<vmem>>, vector<24x128xf32>
    tpu.vector_store %arg6[%c0_14, %c0_15], %30 {strides = array<i32>} : memref<24x128xf32, #tpu.memory_space<vmem>>, vector<24x128xf32>,
    return
  }
  func.func @transform_0(%arg0: i32) -> (i32, i32) {
    %c0_i32 = arith.constant 0 : i32
    %c0_i32_0 = arith.constant 0 : i32
    return %arg0, %c0_i32 : i32, i32
  }
  func.func @transform_1(%arg0: i32) -> (i32, i32) {
    %c0_i32 = arith.constant 0 : i32
    %c0_i32_0 = arith.constant 0 : i32
    %c0_i32_1 = arith.constant 0 : i32
    return %c0_i32, %c0_i32_0 : i32, i32
  }
  func.func @transform_2(%arg0: i32) -> (i32, i32) {
    %c0_i32 = arith.constant 0 : i32
    %c0_i32_0 = arith.constant 0 : i32
    %c0_i32_1 = arith.constant 0 : i32
    return %c0_i32, %c0_i32_0 : i32, i32
  }
  func.func @transform_3(%arg0: i32) -> (i32, i32) {
    %c0_i32 = arith.constant 0 : i32
    %c0_i32_0 = arith.constant 0 : i32
    %c0_i32_1 = arith.constant 0 : i32
    return %c0_i32, %c0_i32_0 : i32, i32
  }
  func.func @transform_4(%arg0: i32) -> (i32, i32) {
    %c0_i32 = arith.constant 0 : i32
    %c0_i32_0 = arith.constant 0 : i32
    %c0_i32_1 = arith.constant 0 : i32
    return %c0_i32, %c0_i32_0 : i32, i32
  }
  func.func @transform_5(%arg0: i32) -> (i32, i32) {
    %c0_i32 = arith.constant 0 : i32
    %c0_i32_0 = arith.constant 0 : i32
    return %arg0, %c0_i32 : i32, i32
  }
}

</mosaic_0001>

<bundles_post_ra>
// kernel: tpu_custom_call.1
= control target key start
LH: loop header
LB: loop body
LE: loop exit
PB: predicated region body
PF: predicated region fallthrough
CT: control target
= control target key end

     0   :  { %10 = vsyncpa [#allocation3], 0  ;;  %s5381_s0 = inlined_call_operand.hbm [shape: f32[24,784], index: 0, kind: input, shape index: {}]   ;;  %s5382_s1 = inlined_call_operand.hbm [shape: bf16[784,1024], index: 1, kind: input, shape index: {}]   ;;  %s5383_s2 = inlined_call_operand.hbm [shape: f32[1,1024], index: 2, kind: input, shape index: {}]   ;;  %s5384_s3 = inlined_call_operand.hbm [shape: bf16[1024,128], index: 3, kind: input, shape index: {}]   ;;  %s5385_s4 = inlined_call_operand.hbm [shape: f32[1,128], index: 4, kind: input, shape index: {}]   ;;  %s5386_s5 = inlined_call_operand.hbm [shape: f32[24,128], index: 5, kind: output, shape index: {}]  }
   0x1   :  { %11 = vsyncpa [#allocation6], 0 }
   0x2   :  { %12 = vsyncpa [#allocation9], 0 }
   0x3   :  { %13 = vsyncpa [#allocation4], 0  ;;  %s5126_s18 = smov [#allocation5]   ;;  %s4986_s22 = scalar_lea.hbm %s5382_s1, 50176 }
   0x4   :  { %s31_s19 = sshll.u32 %s5126_s18, 4  ;;  %p4987_p0 = scmp.ne.s32.totalorder %s5382_s1, %s4986_s22  ;;  %s32_s19 = int_to_ptr.vmem [resolvable:$true] %s31_s19 }
   0x5   :  { %p4990_p1 = scmp.lt.u32.totalorder %s4986_s22, %s5382_s1 }
   0x7   :  { %p4992_p2 = pnand %p4990_p1, %p4987_p0 }
   0x9   :  { %4995 = shalt.err (!%p4992_p2)
}
   0xa   :  { %s4996_s27 = scalar_lea.vmem %s32_s19, 50176  ;;  %p5001_p4 = scmp.lt.s32.totalorder %s32_s19, %s32_s19 }
   0xb   :  { %p4997_p3 = scmp.ne.s32.totalorder %s32_s19, %s4996_s27  ;;  %p5002_p5 = scmp.lt.s32.totalorder %s4996_s27, %s4996_s27 }
   0xd   :  { %p5003_p6 = por %p5002_p5, %p5001_p4 }
   0xf   :  { %p5004_p7 = pnand %p5003_p6, %p4997_p3 }
  0x11   :  { %5007 = shalt.err (!%p5004_p7)
}
  0x12   :  { %s5127_s28 = smov 512   ;;  %s5128_s29 = smov 32  }
  0x13   :  { %37 = dma.hbm_to_vmem [thread:$0]  %s5382_s1, 50176, %s32_s19, [#allocation6], %s5127_s28, %s5127_s28, %s5128_s29  }
  0x14   :  { %s5129_s7 = smov [#allocation8]   ;;  %s5008_s11 = scalar_lea.hbm %s5384_s3, 8192 }
  0x15   :  { %s53_s8 = sshll.u32 %s5129_s7, 4  ;;  %p5009_p8 = scmp.ne.s32.totalorder %s5384_s3, %s5008_s11  ;;  %s54_s8 = int_to_ptr.vmem [resolvable:$true] %s53_s8 }
  0x16   :  { %p5012_p9 = scmp.lt.u32.totalorder %s5008_s11, %s5384_s3 }
  0x18   :  { %p5014_p10 = pnand %p5012_p9, %p5009_p8 }
  0x1a   :  { %5017 = shalt.err (!%p5014_p10)
}
  0x1b   :  { %s5018_s16 = scalar_lea.vmem %s54_s8, 8192  ;;  %p5023_p12 = scmp.lt.s32.totalorder %s54_s8, %s54_s8 }
  0x1c   :  { %p5019_p11 = scmp.ne.s32.totalorder %s54_s8, %s5018_s16  ;;  %p5024_p13 = scmp.lt.s32.totalorder %s5018_s16, %s5018_s16 }
  0x1e   :  { %p5025_p0 = por %p5024_p13, %p5023_p12 }
  0x20   :  { %p5026_p1 = pnand %p5025_p0, %p5019_p11 }
  0x22   :  { %5029 = shalt.err (!%p5026_p1)
}
  0x23   :  { %s5130_s1 = smov 64   ;;  %s5131_s17 = smov 4  }
  0x24   :  { %59 = dma.hbm_to_vmem [thread:$0]  %s5384_s3, 8192, %s54_s8, [#allocation9], %s5130_s1, %s5130_s1, %s5131_s17  }
  0x25   :  { %s5132_s20 = smov [#allocation2]   ;;  %s5030_s24 = scalar_lea.hbm %s5381_s0, 2688 }
  0x26   :  { %s19_s21 = sshll.u32 %s5132_s20, 4  ;;  %p5031_p2 = scmp.ne.s32.totalorder %s5381_s0, %s5030_s24  ;;  %s20_s21 = int_to_ptr.vmem [resolvable:$true] %s19_s21 }
  0x27   :  { %p5034_p3 = scmp.lt.u32.totalorder %s5030_s24, %s5381_s0 }
  0x29   :  { %p5036_p4 = pnand %p5034_p3, %p5031_p2 }
  0x2b   :  { %5039 = shalt.err (!%p5036_p4)
}
  0x2c   :  { %s5040_s29 = scalar_lea.vmem %s20_s21, 2688  ;;  %p5045_p6 = scmp.lt.s32.totalorder %s20_s21, %s20_s21 }
  0x2d   :  { %p5041_p5 = scmp.ne.s32.totalorder %s20_s21, %s5040_s29  ;;  %p5046_p7 = scmp.lt.s32.totalorder %s5040_s29, %s5040_s29 }
  0x2f   :  { %p5047_p8 = por %p5046_p7, %p5045_p6 }
  0x31   :  { %p5048_p9 = pnand %p5047_p8, %p5041_p5 }
  0x33   :  { %5051 = shalt.err (!%p5048_p9)
}
  0x34   :  { %s5133_s3 = smov 896   ;;  %s5134_s30 = smov 56  }
  0x35   :  { %25 = dma.hbm_to_vmem [thread:$0]  %s5381_s0, 2688, %s20_s21, [#allocation3], %s5133_s3, %s5133_s3, %s5134_s30  }
  0x36   :  { %s5135_s8 = smov [#allocation7]   ;;  %s5136_s10 = smov [#allocation10]  }
  0x37   :  { %s44_s9 = sshll.u32 %s5135_s8, 4  ;;  %s66_s11 = sshll.u32 %s5136_s10, 4  ;;  %s45_s9 = int_to_ptr.vmem [resolvable:$true] %s44_s9  ;;  %s67_s11 = int_to_ptr.vmem [resolvable:$true] %s66_s11 }
  0x38   :  { %s5052_s14 = scalar_lea.hbm %s5383_s2, 128 }
  0x39   :  { %p5053_p10 = scmp.ne.s32.totalorder %s5383_s2, %s5052_s14  ;;  %p5056_p11 = scmp.lt.u32.totalorder %s5052_s14, %s5383_s2 }
  0x3b   :  { %p5058_p12 = pnand %p5056_p11, %p5053_p10 }
  0x3d   :  { %5061 = shalt.err (!%p5058_p12)
}
  0x3e   :  { %s5062_s0 = scalar_lea.vmem %s45_s9, 128  ;;  %p5067_p0 = scmp.lt.s32.totalorder %s45_s9, %s45_s9 }
  0x3f   :  { %p5063_p13 = scmp.ne.s32.totalorder %s45_s9, %s5062_s0  ;;  %p5068_p1 = scmp.lt.s32.totalorder %s5062_s0, %s5062_s0 }
  0x41   :  { %p5069_p2 = por %p5068_p1, %p5067_p0 }
  0x43   :  { %p5070_p3 = pnand %p5069_p2, %p5063_p13 }
  0x45   :  { %5073 = shalt.err (!%p5070_p3)
}
  0x46   :  { %47 = dma.hbm_to_vmem [thread:$0]  %s5383_s2, 128, %s45_s9, [#allocation6]  }
  0x47   :  { %s5074_s22 = scalar_lea.hbm %s5385_s4, 16 }
  0x48   :  { %p5075_p4 = scmp.ne.s32.totalorder %s5385_s4, %s5074_s22  ;;  %p5078_p5 = scmp.lt.u32.totalorder %s5074_s22, %s5385_s4 }
  0x4a   :  { %p5080_p6 = pnand %p5078_p5, %p5075_p4 }
  0x4c   :  { %5083 = shalt.err (!%p5080_p6)
}
  0x4d   :  { %s5084_s27 = scalar_lea.vmem %s67_s11, 16  ;;  %s5088_s28 = scalar_lea.vmem %s67_s11, 32 }
  0x4e   :  { %p5085_p7 = scmp.ne.s32.totalorder %s67_s11, %s5084_s27  ;;  %p5089_p8 = scmp.lt.s32.totalorder %s67_s11, %s67_s11 }
  0x4f   :  { %p5090_p9 = scmp.lt.s32.totalorder %s5088_s28, %s5084_s27 }
  0x51   :  { %p5091_p10 = por %p5090_p9, %p5089_p8 }
  0x53   :  { %p5092_p11 = pnand %p5091_p10, %p5085_p7 }
  0x55   :  { %5095 = shalt.err (!%p5092_p11)
}
  0x56   :  { %69 = dma.hbm_to_vmem [thread:$0]  %s5385_s4, 16, %s67_s11, [#allocation9]  }
  0x57   :  { %5118 = dma.done.wait [#allocation3], 2688  }
  0x58   :  { %5119 = vsyncadd [#allocation3], 4294964608 }
  0x59   :  { %5120 = dma.done.wait [#allocation6], 50304  }
  0x5a   :  { %5121 = vsyncadd [#allocation6], 4294916992 }
  0x5b   :  { %5122 = dma.done.wait [#allocation9], 8208  }
  0x5c   :  { %5123 = vsyncadd [#allocation9], 4294959088  ;;  %v121_v0 = vld [vmem:[#allocation5] sm:$0xff]  ;;  %v122_v2 = vld [vmem:[#allocation5 + $0x8] sm:$0xff]  ;;  %vm2515_vm0 = vcmask 130048   ;;  %s5138_s4 = smov [#allocation11]  }
  0x5d   :  { %v125_v1 = vld [vmem:[#allocation5 + $0x20] sm:$0xff]  ;;  %v126_v4 = vld [vmem:[#allocation5 + $0x28] sm:$0xff]  ;;  %v94_v54 = vld [vmem:[#allocation2 + $0x40] sm:$0xff]  ;;  %s4136_s3 = sshll.u32 %s5138_s4, 4  ;;  %s4137_s3 = int_to_ptr.vmem [resolvable:$true] %s4136_s3 }
  0x5e   :  { %v4151_v3 = vcombine.high %v121_v0, %v125_v1  ;;  %v4150_v5 = vcombine.low %v121_v0, %v125_v1  ;;  %v129_v6 = vld [vmem:[#allocation5 + $0x40] sm:$0xff]  ;;  %v4153_v8 = vcombine.high %v122_v2, %v126_v4  ;;  %v4152_v9 = vcombine.low %v122_v2, %v126_v4  ;;  %v130_v11 = vld [vmem:[#allocation5 + $0x48] sm:$0xff]  ;;  %s5096_s30 = scalar_lea.vmem %s4137_s3, 384  ;;  %p5101_p13 = scmp.lt.s32.totalorder %s4137_s3, %s4137_s3 }
  0x5f   :  { %v133_v7 = vld [vmem:[#allocation5 + $0x60] sm:$0xff]  ;;  %v134_v12 = vld [vmem:[#allocation5 + $0x68] sm:$0xff]  ;;  %p5097_p12 = scmp.ne.s32.totalorder %s4137_s3, %s5096_s30  ;;  %p5102_p0 = scmp.lt.s32.totalorder %s5096_s30, %s5096_s30 }
  0x60   :  { %v4159_v10 = vcombine.high %v129_v6, %v133_v7  ;;  %v137_v13 = vld [vmem:[#allocation5 + $0x80] sm:$0xff]  ;;  %2522 = vmatprep.subr.bf16.mxu0 %v4151_v3  ;;  %v4161_v14 = vcombine.high %v130_v11, %v134_v12  ;;  %v138_v16 = vld [vmem:[#allocation5 + $0x88] sm:$0xff]  ;;  %2726 = vmatprep.subr.bf16.mxu1 %v4153_v8  ;;  %v4158_v18 = vcombine.low %v129_v6, %v133_v7 }
  0x61   :  { %v141_v15 = vld [vmem:[#allocation5 + $0xa0] sm:$0xff]  ;;  %v142_v17 = vld [vmem:[#allocation5 + $0xa8] sm:$0xff]  ;;  %2523 = vmatpush1.bf16.msra.mxu0 %v4150_v5  ;;  %2727 = vmatpush1.bf16.msra.mxu1 %v4152_v9  ;;  %v4160_v19 = vcombine.low %v130_v11, %v134_v12  ;;  %p5103_p1 = por %p5102_p0, %p5101_p13 }
  0x62   :  { %2524 = vmatprep.subr.bf16.mxu0 %v4159_v10  ;;  %v4167_v20 = vcombine.high %v137_v13, %v141_v15  ;;  %2728 = vmatprep.subr.bf16.mxu1 %v4161_v14  ;;  %v4169_v21 = vcombine.high %v138_v16, %v142_v17  ;;  %v145_v22 = vld [vmem:[#allocation5 + $0xc0] sm:$0xff]  ;;  %v146_v24 = vld [vmem:[#allocation5 + $0xc8] sm:$0xff]  ;;  %v4166_v26 = vcombine.low %v137_v13, %v141_v15 }
  0x63   :  { %v149_v23 = vld [vmem:[#allocation5 + $0xe0] sm:$0xff]  ;;  %v150_v25 = vld [vmem:[#allocation5 + $0xe8] sm:$0xff]  ;;  %v4168_v27 = vcombine.low %v138_v16, %v142_v17  ;;  %p5104_p2 = pnand %p5103_p1, %p5097_p12 }
  0x64   :  { %v4175_v28 = vcombine.high %v145_v22, %v149_v23  ;;  %v4177_v29 = vcombine.high %v146_v24, %v150_v25  ;;  %v153_v30 = vld [vmem:[#allocation5 + $0x100] sm:$0xff]  ;;  %v154_v32 = vld [vmem:[#allocation5 + $0x108] sm:$0xff]  ;;  %v4174_v34 = vcombine.low %v145_v22, %v149_v23  ;;  %v4176_v35 = vcombine.low %v146_v24, %v150_v25 }
  0x65   :  { %2525 = vmatpush1.bf16.msra.mxu0 %v4158_v18  ;;  %2729 = vmatpush1.bf16.msra.mxu1 %v4160_v19  ;;  %v157_v31 = vld [vmem:[#allocation5 + $0x120] sm:$0xff]  ;;  %v158_v33 = vld [vmem:[#allocation5 + $0x128] sm:$0xff] }
  0x66   :  { %2526 = vmatprep.subr.bf16.mxu0 %v4167_v20  ;;  %2730 = vmatprep.subr.bf16.mxu1 %v4169_v21  ;;  %v4183_v36 = vcombine.high %v153_v30, %v157_v31  ;;  %v4185_v37 = vcombine.high %v154_v32, %v158_v33  ;;  %v161_v38 = vld [vmem:[#allocation5 + $0x140] sm:$0xff]  ;;  %v162_v40 = vld [vmem:[#allocation5 + $0x148] sm:$0xff]  ;;  %v4182_v42 = vcombine.low %v153_v30, %v157_v31 }
  0x67   :  { %v165_v39 = vld [vmem:[#allocation5 + $0x160] sm:$0xff]  ;;  %v166_v41 = vld [vmem:[#allocation5 + $0x168] sm:$0xff]  ;;  %v4184_v43 = vcombine.low %v154_v32, %v158_v33 }
  0x68   :  { %v4191_v44 = vcombine.high %v161_v38, %v165_v39  ;;  %v4193_v45 = vcombine.high %v162_v40, %v166_v41  ;;  %v169_v46 = vld [vmem:[#allocation5 + $0x180] sm:$0xff]  ;;  %v170_v48 = vld [vmem:[#allocation5 + $0x188] sm:$0xff]  ;;  %v4190_v50 = vcombine.low %v161_v38, %v165_v39  ;;  %v4192_v51 = vcombine.low %v162_v40, %v166_v41 }
  0x69   :  { %2527 = vmatpush1.bf16.msra.mxu0 %v4166_v26  ;;  %2731 = vmatpush1.bf16.msra.mxu1 %v4168_v27  ;;  %v173_v47 = vld [vmem:[#allocation5 + $0x1a0] sm:$0xff]  ;;  %v174_v49 = vld [vmem:[#allocation5 + $0x1a8] sm:$0xff] }
  0x6a   :  { %2528 = vmatprep.subr.bf16.mxu0 %v4175_v28  ;;  %2732 = vmatprep.subr.bf16.mxu1 %v4177_v29  ;;  %v4199_v52 = vcombine.high %v169_v46, %v173_v47  ;;  %v87_v53 = vld [vmem:[#allocation2 + $0x8] sm:$0xff]  ;;  %v4201_v55 = vcombine.high %v170_v48, %v174_v49  ;;  %v178_v59 = vld [vmem:[#allocation5 + $0x1c8] sm:$0xff]  ;;  %v4198_v61 = vcombine.low %v169_v46, %v173_v47 }
  0x6b   :  { %v177_v56 = vld [vmem:[#allocation5 + $0x1c0] sm:$0xff]  ;;  %v5231_v58 = vpack.c.bf16 %v94_v54, %v87_v53  ;;  %v182_v60 = vld [vmem:[#allocation5 + $0x1e8] sm:$0xff]  ;;  %v4200_v62 = vcombine.low %v170_v48, %v174_v49 }
  0x6c   :  { %v181_v57 = vld [vmem:[#allocation5 + $0x1e0] sm:$0xff]  ;;  %v4209_v0 = vcombine.high %v178_v59, %v182_v60  ;;  %v186_v3 = vld [vmem:[#allocation5 + $0x208] sm:$0xff]  ;;  %v4208_v6 = vcombine.low %v178_v59, %v182_v60 }
  0x6d   :  { %2529 = vmatpush1.bf16.msra.mxu0 %v4174_v34  ;;  %2733 = vmatpush1.bf16.msra.mxu1 %v4176_v35  ;;  %v4207_v63 = vcombine.high %v177_v56, %v181_v57  ;;  %v185_v1 = vld [vmem:[#allocation5 + $0x200] sm:$0xff]  ;;  %v190_v4 = vld [vmem:[#allocation5 + $0x228] sm:$0xff]  ;;  %v4206_v5 = vcombine.low %v177_v56, %v181_v57 }
  0x6e   :  { %2530 = vmatprep.subr.bf16.mxu0 %v4183_v36  ;;  %2734 = vmatprep.subr.bf16.mxu1 %v4185_v37  ;;  %v189_v2 = vld [vmem:[#allocation5 + $0x220] sm:$0xff]  ;;  %v4217_v8 = vcombine.high %v186_v3, %v190_v4  ;;  %v194_v11 = vld [vmem:[#allocation5 + $0x248] sm:$0xff]  ;;  %v4216_v14 = vcombine.low %v186_v3, %v190_v4 }
  0x6f   :  { %2554 = vmatprep.mubr.bf16.mxu0 %v5231_v58  ;;  %2758 = vmatprep.mubr.bf16.mxu1 %v5231_v58  ;;  %v4215_v7 = vcombine.high %v185_v1, %v189_v2  ;;  %v193_v9 = vld [vmem:[#allocation5 + $0x240] sm:$0xff]  ;;  %v198_v12 = vld [vmem:[#allocation5 + $0x268] sm:$0xff]  ;;  %v4214_v13 = vcombine.low %v185_v1, %v189_v2 }
  0x70   :  { %v197_v10 = vld [vmem:[#allocation5 + $0x260] sm:$0xff]  ;;  %v4225_v16 = vcombine.high %v194_v11, %v198_v12  ;;  %v202_v19 = vld [vmem:[#allocation5 + $0x288] sm:$0xff]  ;;  %v4224_v22 = vcombine.low %v194_v11, %v198_v12 }
  0x71   :  { %2531 = vmatpush1.bf16.msra.mxu0 %v4182_v42  ;;  %2735 = vmatpush1.bf16.msra.mxu1 %v4184_v43  ;;  %v4223_v15 = vcombine.high %v193_v9, %v197_v10  ;;  %v201_v17 = vld [vmem:[#allocation5 + $0x280] sm:$0xff]  ;;  %v206_v20 = vld [vmem:[#allocation5 + $0x2a8] sm:$0xff]  ;;  %v4222_v21 = vcombine.low %v193_v9, %v197_v10 }
  0x72   :  { %2532 = vmatprep.subr.bf16.mxu0 %v4191_v44  ;;  %2736 = vmatprep.subr.bf16.mxu1 %v4193_v45  ;;  %v205_v18 = vld [vmem:[#allocation5 + $0x2a0] sm:$0xff]  ;;  %v4233_v24 = vcombine.high %v202_v19, %v206_v20  ;;  %v210_v27 = vld [vmem:[#allocation5 + $0x2c8] sm:$0xff]  ;;  %v4232_v30 = vcombine.low %v202_v19, %v206_v20 }
  0x73   :  { %v4231_v23 = vcombine.high %v201_v17, %v205_v18  ;;  %v209_v25 = vld [vmem:[#allocation5 + $0x2c0] sm:$0xff]  ;;  %v214_v28 = vld [vmem:[#allocation5 + $0x2e8] sm:$0xff]  ;;  %v4230_v29 = vcombine.low %v201_v17, %v205_v18  ;;  %v101_v17 = vld [vmem:[#allocation2 + $0x78] sm:$0xff] }
  0x74   :  { %v213_v26 = vld [vmem:[#allocation5 + $0x2e0] sm:$0xff]  ;;  %v4241_v32 = vcombine.high %v210_v27, %v214_v28  ;;  %v218_v35 = vld [vmem:[#allocation5 + $0x308] sm:$0xff]  ;;  %v4240_v38 = vcombine.low %v210_v27, %v214_v28 }
  0x75   :  { %2533 = vmatpush1.bf16.msra.mxu0 %v4190_v50  ;;  %2737 = vmatpush1.bf16.msra.mxu1 %v4192_v51  ;;  %v4239_v31 = vcombine.high %v209_v25, %v213_v26  ;;  %v217_v33 = vld [vmem:[#allocation5 + $0x300] sm:$0xff]  ;;  %v222_v36 = vld [vmem:[#allocation5 + $0x328] sm:$0xff]  ;;  %v4238_v37 = vcombine.low %v209_v25, %v213_v26 }
  0x76   :  { %2534 = vmatprep.subr.bf16.mxu0 %v4199_v52  ;;  %2738 = vmatprep.subr.bf16.mxu1 %v4201_v55  ;;  %v221_v34 = vld [vmem:[#allocation5 + $0x320] sm:$0xff]  ;;  %v4249_v40 = vcombine.high %v218_v35, %v222_v36  ;;  %v226_v43 = vld [vmem:[#allocation5 + $0x348] sm:$0xff]  ;;  %v4248_v46 = vcombine.low %v218_v35, %v222_v36  ;;  %v89_v36 = vld [vmem:[#allocation2 + $0x18] sm:$0xff] }
  0x77   :  { %v4247_v39 = vcombine.high %v217_v33, %v221_v34  ;;  %v225_v41 = vld [vmem:[#allocation5 + $0x340] sm:$0xff]  ;;  %v230_v44 = vld [vmem:[#allocation5 + $0x368] sm:$0xff]  ;;  %v4246_v45 = vcombine.low %v217_v33, %v221_v34 }
  0x78   :  { %v229_v42 = vld [vmem:[#allocation5 + $0x360] sm:$0xff]  ;;  %v4257_v48 = vcombine.high %v226_v43, %v230_v44  ;;  %v234_v51 = vld [vmem:[#allocation5 + $0x388] sm:$0xff]  ;;  %v4256_v54 = vcombine.low %v226_v43, %v230_v44 }
  0x79   :  { %2535 = vmatpush1.bf16.msra.mxu0 %v4198_v61  ;;  %2739 = vmatpush1.bf16.msra.mxu1 %v4200_v62  ;;  %v4255_v47 = vcombine.high %v225_v41, %v229_v42  ;;  %v233_v49 = vld [vmem:[#allocation5 + $0x380] sm:$0xff]  ;;  %v238_v52 = vld [vmem:[#allocation5 + $0x3a8] sm:$0xff]  ;;  %v4254_v53 = vcombine.low %v225_v41, %v229_v42 }
  0x7a   :  { %2536 = vmatprep.subr.bf16.mxu0 %v4207_v63  ;;  %2740 = vmatprep.subr.bf16.mxu1 %v4209_v0  ;;  %v237_v50 = vld [vmem:[#allocation5 + $0x3a0] sm:$0xff]  ;;  %v4265_v56 = vcombine.high %v234_v51, %v238_v52  ;;  %v242_v60 = vld [vmem:[#allocation5 + $0x3c8] sm:$0xff]  ;;  %v4264_v63 = vcombine.low %v234_v51, %v238_v52 }
  0x7b   :  { %v4263_v55 = vcombine.high %v233_v49, %v237_v50  ;;  %v241_v57 = vld [vmem:[#allocation5 + $0x3c0] sm:$0xff]  ;;  %v246_v61 = vld [vmem:[#allocation5 + $0x3e8] sm:$0xff]  ;;  %v4262_v62 = vcombine.low %v233_v49, %v237_v50 }
  0x7c   :  { %v245_v59 = vld [vmem:[#allocation5 + $0x3e0] sm:$0xff]  ;;  %v4273_v1 = vcombine.high %v242_v60, %v246_v61  ;;  %v250_v4 = vld [vmem:[#allocation5 + $0x408] sm:$0xff]  ;;  %v4272_v9 = vcombine.low %v242_v60, %v246_v61 }
  0x7d   :  { %2537 = vmatpush1.bf16.msra.mxu0 %v4206_v5  ;;  %2741 = vmatpush1.bf16.msra.mxu1 %v4208_v6  ;;  %v4271_v0 = vcombine.high %v241_v57, %v245_v59  ;;  %v249_v2 = vld [vmem:[#allocation5 + $0x400] sm:$0xff]  ;;  %v254_v5 = vld [vmem:[#allocation5 + $0x428] sm:$0xff]  ;;  %v4270_v6 = vcombine.low %v241_v57, %v245_v59 }
  0x7e   :  { %2538 = vmatprep.subr.bf16.mxu0 %v4215_v7  ;;  %2742 = vmatprep.subr.bf16.mxu1 %v4217_v8  ;;  %v253_v3 = vld [vmem:[#allocation5 + $0x420] sm:$0xff]  ;;  %v86_v7 = vld [vmem:[#allocation2] sm:$0xff]  ;;  %v93_v8 = vld [vmem:[#allocation2 + $0x38] sm:$0xff]  ;;  %v4281_v11 = vcombine.high %v250_v4, %v254_v5  ;;  %v4280_v19 = vcombine.low %v250_v4, %v254_v5 }
  0x7f   :  { %v4279_v10 = vcombine.high %v249_v2, %v253_v3  ;;  %v257_v12 = vld [vmem:[#allocation5 + $0x440] sm:$0xff]  ;;  %v4278_v18 = vcombine.low %v249_v2, %v253_v3  ;;  %v266_v25 = vld [vmem:[#allocation5 + $0x488] sm:$0xff] }
  0x80   :  { %v270_v26 = vld [vmem:[#allocation5 + $0x4a8] sm:$0xff]  ;;  %v285_v41 = vld [vmem:[#allocation5 + $0x520] sm:$0xff] }
  0x81   :  { %2539 = vmatpush1.bf16.msra.mxu0 %v4214_v13  ;;  %2743 = vmatpush1.bf16.msra.mxu1 %v4216_v14  ;;  %v261_v13 = vld [vmem:[#allocation5 + $0x460] sm:$0xff]  ;;  %v5235_v14 = vpack.c.bf16 %v93_v8, %v86_v7  ;;  %v100_v28 = vld [vmem:[#allocation2 + $0x70] sm:$0xff]  ;;  %v4297_v33 = vcombine.high %v266_v25, %v270_v26  ;;  %v4296_v42 = vcombine.low %v266_v25, %v270_v26 }
  0x82   :  { %2540 = vmatprep.subr.bf16.mxu0 %v4223_v15  ;;  %2744 = vmatprep.subr.bf16.mxu1 %v4225_v16  ;;  %v258_v15 = vld [vmem:[#allocation5 + $0x448] sm:$0xff]  ;;  %v4287_v20 = vcombine.high %v257_v12, %v261_v13  ;;  %v4286_v27 = vcombine.low %v257_v12, %v261_v13  ;;  %v289_v51 = vld [vmem:[#allocation5 + $0x540] sm:$0xff] }
  0x83   :  { %v262_v16 = vld [vmem:[#allocation5 + $0x468] sm:$0xff]  ;;  %v297_v57 = vld [vmem:[#allocation5 + $0x580] sm:$0xff] }
  0x84   :  { %v274_v34 = vld [vmem:[#allocation5 + $0x4c8] sm:$0xff]  ;;  %v301_v59 = vld [vmem:[#allocation5 + $0x5a0] sm:$0xff] }
  0x85   :  { %2541 = vmatpush1.bf16.msra.mxu0 %v4222_v21  ;;  %2745 = vmatpush1.bf16.msra.mxu1 %v4224_v22  ;;  %v4289_v21 = vcombine.high %v258_v15, %v262_v16  ;;  %v265_v22 = vld [vmem:[#allocation5 + $0x480] sm:$0xff]  ;;  %v278_v35 = vld [vmem:[#allocation5 + $0x4e8] sm:$0xff]  ;;  %v4327_v3 = vcombine.high %v297_v57, %v301_v59 }
  0x86   :  { %2542 = vmatprep.subr.bf16.mxu0 %v4231_v23  ;;  %2746 = vmatprep.subr.bf16.mxu1 %v4233_v24  ;;  %v269_v23 = vld [vmem:[#allocation5 + $0x4a0] sm:$0xff]  ;;  %v5237_v24 = vpack.c.bf16 %v101_v17, %v101_v17  ;;  %v282_v44 = vld [vmem:[#allocation5 + $0x508] sm:$0xff]  ;;  %v4304_v49 = vcombine.low %v274_v34, %v278_v35 }
  0x87   :  { %v305_v4 = vld [vmem:[#allocation5 + $0x5c0] sm:$0xff]  ;;  %v310_v8 = vld [vmem:[#allocation5 + $0x5e8] sm:$0xff] }
  0x88   :  { %v309_v5 = vld [vmem:[#allocation5 + $0x5e0] sm:$0xff]  ;;  %v318_v17 = vld [vmem:[#allocation5 + $0x628] sm:$0xff] }
  0x89   :  { %2543 = vmatpush1.bf16.msra.mxu0 %v4230_v29  ;;  %2747 = vmatpush1.bf16.msra.mxu1 %v4232_v30  ;;  %v4288_v29 = vcombine.low %v258_v15, %v262_v16  ;;  %v4295_v30 = vcombine.high %v265_v22, %v269_v23  ;;  %v313_v12 = vld [vmem:[#allocation5 + $0x600] sm:$0xff]  ;;  %v314_v16 = vld [vmem:[#allocation5 + $0x608] sm:$0xff] }
  0x8a   :  { %2544 = vmatprep.subr.bf16.mxu0 %v4239_v31  ;;  %2748 = vmatprep.subr.bf16.mxu1 %v4241_v32  ;;  %v273_v31 = vld [vmem:[#allocation5 + $0x4c0] sm:$0xff]  ;;  %v4345_v25 = vcombine.high %v314_v16, %v318_v17  ;;  %v326_v26 = vld [vmem:[#allocation5 + $0x668] sm:$0xff] }
  0x8b   :  { %v277_v32 = vld [vmem:[#allocation5 + $0x4e0] sm:$0xff] }
  0x8c   :  { %v4303_v43 = vcombine.high %v273_v31, %v277_v32  ;;  %v317_v13 = vld [vmem:[#allocation5 + $0x620] sm:$0xff] }
  0x8d   :  { %2545 = vmatpush1.bf16.msra.mxu0 %v4238_v37  ;;  %2749 = vmatpush1.bf16.msra.mxu1 %v4240_v38  ;;  %v5243_v37 = vpack.c.bf16 %v100_v28, %v100_v28  ;;  %v96_v38 = vld [vmem:[#allocation2 + $0x50] sm:$0xff]  ;;  %v4344_v28 = vcombine.low %v314_v16, %v318_v17  ;;  %v377_v16 = vld [vmem:[#allocation5 + $0x800] sm:$0xff] }
  0x8e   :  { %2546 = vmatprep.subr.bf16.mxu0 %v4247_v39  ;;  %2750 = vmatprep.subr.bf16.mxu1 %v4249_v40  ;;  %v4294_v39 = vcombine.low %v265_v22, %v269_v23  ;;  %v281_v40 = vld [vmem:[#allocation5 + $0x500] sm:$0xff]  ;;  %v322_v23 = vld [vmem:[#allocation5 + $0x648] sm:$0xff] }
  0x8f   :  { %v4311_v50 = vcombine.high %v281_v40, %v285_v41  ;;  %v325_v22 = vld [vmem:[#allocation5 + $0x660] sm:$0xff] }
  0x91   :  { %2547 = vmatpush1.bf16.msra.mxu0 %v4246_v45  ;;  %2751 = vmatpush1.bf16.msra.mxu1 %v4248_v46  ;;  %v286_v45 = vld [vmem:[#allocation5 + $0x528] sm:$0xff]  ;;  %v4305_v46 = vcombine.high %v274_v34, %v278_v35 }
  0x92   :  { %2548 = vmatprep.subr.bf16.mxu0 %v4255_v47  ;;  %2752 = vmatprep.subr.bf16.mxu1 %v4257_v48  ;;  %v5245_v47 = vpack.c.bf16 %v96_v38, %v89_v36  ;;  %v4302_v48 = vcombine.low %v273_v31, %v277_v32  ;;  %v4313_v52 = vcombine.high %v282_v44, %v286_v45  ;;  %v333_v31 = vld [vmem:[#allocation5 + $0x6a0] sm:$0xff]  ;;  %v330_v32 = vld [vmem:[#allocation5 + $0x688] sm:$0xff] }
  0x93   :  { %v4312_v60 = vcombine.low %v282_v44, %v286_v45  ;;  %v334_v34 = vld [vmem:[#allocation5 + $0x6a8] sm:$0xff]  ;;  %v4352_v36 = vcombine.low %v322_v23, %v326_v26 }
  0x94   :  { %v4360_v45 = vcombine.low %v330_v32, %v334_v34 }
  0x95   :  { %2549 = vmatpush1.bf16.msra.mxu0 %v4254_v53  ;;  %2753 = vmatpush1.bf16.msra.mxu1 %v4256_v54  ;;  %v293_v53 = vld [vmem:[#allocation5 + $0x560] sm:$0xff]  ;;  %v290_v54 = vld [vmem:[#allocation5 + $0x548] sm:$0xff] }
  0x96   :  { %2550 = vmatprep.subr.bf16.mxu0 %v4263_v55  ;;  %2754 = vmatprep.subr.bf16.mxu1 %v4265_v56  ;;  %v294_v55 = vld [vmem:[#allocation5 + $0x568] sm:$0xff]  ;;  %v4310_v56 = vcombine.low %v281_v40, %v285_v41  ;;  %v4319_v61 = vcombine.high %v289_v51, %v293_v53  ;;  %v341_v40 = vld [vmem:[#allocation5 + $0x6e0] sm:$0xff] }
  0x97   :  { %v4320_v2 = vcombine.low %v290_v54, %v294_v55  ;;  %v338_v41 = vld [vmem:[#allocation5 + $0x6c8] sm:$0xff] }
  0x99   :  { %2551 = vmatpush1.bf16.msra.mxu0 %v4262_v62  ;;  %2755 = vmatpush1.bf16.msra.mxu1 %v4264_v63  ;;  %v298_v62 = vld [vmem:[#allocation5 + $0x588] sm:$0xff] }
  0x9a   :  { %2552 = vmatprep.subr.bf16.mxu0 %v4271_v0  ;;  %2756 = vmatprep.subr.bf16.mxu1 %v4273_v1  ;;  %v302_v63 = vld [vmem:[#allocation5 + $0x5a8] sm:$0xff]  ;;  %v4321_v0 = vcombine.high %v290_v54, %v294_v55  ;;  %v4318_v1 = vcombine.low %v289_v51, %v293_v53 }
  0x9b   :  { %v4329_v7 = vcombine.high %v298_v62, %v302_v63 }
  0x9d   :  { %2553 = vmatpush1.bf16.msra.mxu0 %v4270_v6  ;;  %2757 = vmatpush1.bf16.msra.mxu1 %v4272_v9  ;;  %v306_v6 = vld [vmem:[#allocation5 + $0x5c8] sm:$0xff]  ;;  %v4326_v9 = vcombine.low %v297_v57, %v301_v59  ;;  %v357_v57 = vld [vmem:[#allocation5 + $0x760] sm:$0xff] }
  0x9e   :  { %2573 = vmatprep.subr.bf16.mxu0 %v4279_v10  ;;  %2777 = vmatprep.subr.bf16.mxu1 %v4281_v11  ;;  %v4328_v10 = vcombine.low %v298_v62, %v302_v63  ;;  %v4335_v11 = vcombine.high %v305_v4, %v309_v5  ;;  %v4337_v15 = vcombine.high %v306_v6, %v310_v8  ;;  %v354_v59 = vld [vmem:[#allocation5 + $0x748] sm:$0xff] }
  0xa0   :  { %2555 = vmatmul.mubr.bf16.vlgmr.msra.gmra.mrb[0].mxu0 %v5235_v14  ;;  %2759 = vmatmul.mubr.bf16.vlgmr.msra.gmra.mrb[0].mxu1 %v5235_v14 }
  0xa1   :  { %2574 = vmatpush1.bf16.msra.mxu0 %v4278_v18  ;;  %2778 = vmatpush1.bf16.msra.mxu1 %v4280_v19  ;;  %v4334_v18 = vcombine.low %v305_v4, %v309_v5  ;;  %v4336_v19 = vcombine.low %v306_v6, %v310_v8  ;;  %v366_v5 = vld [vmem:[#allocation5 + $0x7a8] sm:$0xff] }
  0xa2   :  { %2575 = vmatprep.subr.bf16.mxu0 %v4287_v20  ;;  %2779 = vmatprep.subr.bf16.mxu1 %v4289_v21  ;;  %v4343_v20 = vcombine.high %v313_v12, %v317_v13  ;;  %v321_v21 = vld [vmem:[#allocation5 + $0x640] sm:$0xff] }
  0xa3   :  { %2564 = vmatprep.mubr.bf16.mxu0 %v5237_v24  ;;  %2768 = vmatprep.mubr.bf16.mxu1 %v5237_v24  ;;  %v4350_v35 = vcombine.low %v321_v21, %v325_v22 }
  0xa5   :  { %2576 = vmatpush1.bf16.msra.mxu0 %v4286_v27  ;;  %2780 = vmatpush1.bf16.msra.mxu1 %v4288_v29  ;;  %v4342_v27 = vcombine.low %v313_v12, %v317_v13  ;;  %v4351_v29 = vcombine.high %v321_v21, %v325_v22  ;;  %v374_v13 = vld [vmem:[#allocation5 + $0x7e8] sm:$0xff] }
  0xa6   :  { %2577 = vmatprep.subr.bf16.mxu0 %v4295_v30  ;;  %2781 = vmatprep.subr.bf16.mxu1 %v4297_v33  ;;  %v329_v30 = vld [vmem:[#allocation5 + $0x680] sm:$0xff]  ;;  %v4353_v33 = vcombine.high %v322_v23, %v326_v26  ;;  %v382_v21 = vld [vmem:[#allocation5 + $0x828] sm:$0xff] }
  0xa7   :  { %v4359_v38 = vcombine.high %v329_v30, %v333_v31  ;;  %v4358_v44 = vcombine.low %v329_v30, %v333_v31  ;;  %v88_v23 = vld [vmem:[#allocation2 + $0x10] sm:$0xff]  ;;  %v389_v30 = vld [vmem:[#allocation5 + $0x860] sm:$0xff] }
  0xa8   :  { %2565 = vmatmul.mubr.bf16.gmra.mrb[4].mxu0 %v5243_v37  ;;  %2769 = vmatmul.mubr.bf16.gmra.mrb[4].mxu1 %v5243_v37  ;;  %v386_v31 = vld [vmem:[#allocation5 + $0x848] sm:$0xff] }
  0xa9   :  { %2578 = vmatpush1.bf16.msra.mxu0 %v4294_v39  ;;  %2782 = vmatpush1.bf16.msra.mxu1 %v4296_v42  ;;  %v337_v39 = vld [vmem:[#allocation5 + $0x6c0] sm:$0xff]  ;;  %v4361_v42 = vcombine.high %v330_v32, %v334_v34  ;;  %v390_v32 = vld [vmem:[#allocation5 + $0x868] sm:$0xff] }
  0xaa   :  { %2579 = vmatprep.subr.bf16.mxu0 %v4303_v43  ;;  %2783 = vmatprep.subr.bf16.mxu1 %v4305_v46  ;;  %v342_v43 = vld [vmem:[#allocation5 + $0x6e8] sm:$0xff]  ;;  %v4367_v46 = vcombine.high %v337_v39, %v341_v40  ;;  %v4366_v53 = vcombine.low %v337_v39, %v341_v40  ;;  %v103_v34 = vld [vmem:[#allocation2 + $0x88] sm:$0xff] }
  0xab   :  { %2605 = vmatprep.mubr.bf16.mxu0 %v5245_v47  ;;  %2809 = vmatprep.mubr.bf16.mxu1 %v5245_v47  ;;  %v4369_v51 = vcombine.high %v338_v41, %v342_v43  ;;  %v4368_v54 = vcombine.low %v338_v41, %v342_v43  ;;  %v393_v40 = vld [vmem:[#allocation5 + $0x880] sm:$0xff]  ;;  %v4417_v43 = vcombine.high %v386_v31, %v390_v32 }
  0xac   :  { %v397_v41 = vld [vmem:[#allocation5 + $0x8a0] sm:$0xff] }
  0xad   :  { %2580 = vmatpush1.bf16.msra.mxu0 %v4302_v48  ;;  %2784 = vmatpush1.bf16.msra.mxu1 %v4304_v49  ;;  %v345_v48 = vld [vmem:[#allocation5 + $0x700] sm:$0xff] }
  0xae   :  { %2581 = vmatprep.subr.bf16.mxu0 %v4311_v50  ;;  %2785 = vmatprep.subr.bf16.mxu1 %v4313_v52  ;;  %v349_v49 = vld [vmem:[#allocation5 + $0x720] sm:$0xff]  ;;  %v346_v50 = vld [vmem:[#allocation5 + $0x708] sm:$0xff] }
  0xaf   :  { %v350_v52 = vld [vmem:[#allocation5 + $0x728] sm:$0xff]  ;;  %v4375_v55 = vcombine.high %v345_v48, %v349_v49  ;;  %v4374_v62 = vcombine.low %v345_v48, %v349_v49  ;;  %v102_v48 = vld [vmem:[#allocation2 + $0x80] sm:$0xff]  ;;  %v4416_v49 = vcombine.low %v386_v31, %v390_v32 }
  0xb0   :  { %v4376_v63 = vcombine.low %v346_v50, %v350_v52 }
  0xb1   :  { %2582 = vmatpush1.bf16.msra.mxu0 %v4310_v56  ;;  %2786 = vmatpush1.bf16.msra.mxu1 %v4312_v60  ;;  %v353_v56 = vld [vmem:[#allocation5 + $0x740] sm:$0xff]  ;;  %v4377_v60 = vcombine.high %v346_v50, %v350_v52  ;;  %v4423_v50 = vcombine.high %v393_v40, %v397_v41 }
  0xb2   :  { %2583 = vmatprep.subr.bf16.mxu0 %v4319_v61  ;;  %2787 = vmatprep.subr.bf16.mxu1 %v4321_v0  ;;  %v358_v61 = vld [vmem:[#allocation5 + $0x768] sm:$0xff]  ;;  %v4383_v0 = vcombine.high %v353_v56, %v357_v57  ;;  %v4382_v6 = vcombine.low %v353_v56, %v357_v57  ;;  %v401_v52 = vld [vmem:[#allocation5 + $0x8c0] sm:$0xff]  ;;  %v5259_v56 = vpack.c.bf16 %v102_v48, %v102_v48 }
  0xb3   :  { %v4385_v4 = vcombine.high %v354_v59, %v358_v61  ;;  %v91_v57 = vld [vmem:[#allocation2 + $0x28] sm:$0xff] }
  0xb4   :  { %v453_v48 = vld [vmem:[#allocation5 + $0xa60] sm:$0xff] }
  0xb5   :  { %2584 = vmatpush1.bf16.msra.mxu0 %v4318_v1  ;;  %2788 = vmatpush1.bf16.msra.mxu1 %v4320_v2  ;;  %v361_v1 = vld [vmem:[#allocation5 + $0x780] sm:$0xff] }
  0xb6   :  { %2585 = vmatprep.subr.bf16.mxu0 %v4327_v3  ;;  %2789 = vmatprep.subr.bf16.mxu1 %v4329_v7  ;;  %v365_v2 = vld [vmem:[#allocation5 + $0x7a0] sm:$0xff]  ;;  %v362_v3 = vld [vmem:[#allocation5 + $0x788] sm:$0xff]  ;;  %v4384_v7 = vcombine.low %v354_v59, %v358_v61  ;;  %v98_v59 = vld [vmem:[#allocation2 + $0x60] sm:$0xff] }
  0xb7   :  { %v4391_v8 = vcombine.high %v361_v1, %v365_v2  ;;  %v4393_v12 = vcombine.high %v362_v3, %v366_v5  ;;  %v4392_v17 = vcombine.low %v362_v3, %v366_v5  ;;  %v410_v3 = vld [vmem:[#allocation5 + $0x908] sm:$0xff] }
  0xb9   :  { %2586 = vmatpush1.bf16.msra.mxu0 %v4326_v9  ;;  %2790 = vmatpush1.bf16.msra.mxu1 %v4328_v10  ;;  %v369_v9 = vld [vmem:[#allocation5 + $0x7c0] sm:$0xff] }
  0xba   :  { %2587 = vmatprep.subr.bf16.mxu0 %v4335_v11  ;;  %2791 = vmatprep.subr.bf16.mxu1 %v4337_v15  ;;  %v373_v10 = vld [vmem:[#allocation5 + $0x7e0] sm:$0xff]  ;;  %v370_v11 = vld [vmem:[#allocation5 + $0x7c8] sm:$0xff]  ;;  %v4390_v15 = vcombine.low %v361_v1, %v365_v2  ;;  %v5261_v2 = vpack.c.bf16 %v98_v59, %v91_v57 }
  0xbb   :  { %v4401_v22 = vcombine.high %v370_v11, %v374_v13  ;;  %v4398_v26 = vcombine.low %v369_v9, %v373_v10  ;;  %v413_v1 = vld [vmem:[#allocation5 + $0x920] sm:$0xff]  ;;  %v458_v59 = vld [vmem:[#allocation5 + $0xa88] sm:$0xff] }
  0xbc   :  { %v461_v57 = vld [vmem:[#allocation5 + $0xaa0] sm:$0xff] }
  0xbd   :  { %2588 = vmatpush1.bf16.msra.mxu0 %v4334_v18  ;;  %2792 = vmatpush1.bf16.msra.mxu1 %v4336_v19  ;;  %v4399_v18 = vcombine.high %v369_v9, %v373_v10  ;;  %v381_v19 = vld [vmem:[#allocation5 + $0x820] sm:$0xff] }
  0xbe   :  { %2589 = vmatprep.subr.bf16.mxu0 %v4343_v20  ;;  %2793 = vmatprep.subr.bf16.mxu1 %v4345_v25  ;;  %v378_v20 = vld [vmem:[#allocation5 + $0x808] sm:$0xff]  ;;  %v95_v25 = vld [vmem:[#allocation2 + $0x48] sm:$0xff] }
  0xbf   :  { %v417_v9 = vld [vmem:[#allocation5 + $0x940] sm:$0xff] }
  0xc0   :  { %v421_v10 = vld [vmem:[#allocation5 + $0x960] sm:$0xff] }
  0xc1   :  { %2590 = vmatpush1.bf16.msra.mxu0 %v4342_v27  ;;  %2794 = vmatpush1.bf16.msra.mxu1 %v4344_v28  ;;  %v385_v27 = vld [vmem:[#allocation5 + $0x840] sm:$0xff]  ;;  %v4400_v28 = vcombine.low %v370_v11, %v374_v13  ;;  %v418_v11 = vld [vmem:[#allocation5 + $0x948] sm:$0xff] }
  0xc2   :  { %2591 = vmatprep.subr.bf16.mxu0 %v4351_v29  ;;  %2795 = vmatprep.subr.bf16.mxu1 %v4353_v33  ;;  %v4407_v29 = vcombine.high %v377_v16, %v381_v19  ;;  %v4409_v33 = vcombine.high %v378_v20, %v382_v21  ;;  %v4415_v39 = vcombine.high %v385_v27, %v389_v30 }
  0xc5   :  { %2592 = vmatpush1.bf16.msra.mxu0 %v4350_v35  ;;  %2796 = vmatpush1.bf16.msra.mxu1 %v4352_v36  ;;  %v5251_v35 = vpack.c.bf16 %v95_v25, %v88_v23  ;;  %v4406_v36 = vcombine.low %v377_v16, %v381_v19  ;;  %v4447_v16 = vcombine.high %v417_v9, %v421_v10  ;;  %v429_v19 = vld [vmem:[#allocation5 + $0x9a0] sm:$0xff] }
  0xc6   :  { %2593 = vmatprep.subr.bf16.mxu0 %v4359_v38  ;;  %2797 = vmatprep.subr.bf16.mxu1 %v4361_v42  ;;  %v4408_v38 = vcombine.low %v378_v20, %v382_v21  ;;  %v394_v42 = vld [vmem:[#allocation5 + $0x888] sm:$0xff] }
  0xc7   :  { %v426_v20 = vld [vmem:[#allocation5 + $0x988] sm:$0xff] }
  0xc8   :  { %v430_v21 = vld [vmem:[#allocation5 + $0x9a8] sm:$0xff] }
  0xc9   :  { %2594 = vmatpush1.bf16.msra.mxu0 %v4358_v44  ;;  %2798 = vmatpush1.bf16.msra.mxu1 %v4360_v45  ;;  %v398_v44 = vld [vmem:[#allocation5 + $0x8a8] sm:$0xff]  ;;  %v5253_v45 = vpack.c.bf16 %v103_v34, %v103_v34  ;;  %v4456_v32 = vcombine.low %v426_v20, %v430_v21 }
  0xca   :  { %2595 = vmatprep.subr.bf16.mxu0 %v4367_v46  ;;  %2799 = vmatprep.subr.bf16.mxu1 %v4369_v51  ;;  %v4414_v46 = vcombine.low %v385_v27, %v389_v30  ;;  %v4425_v51 = vcombine.high %v394_v42, %v398_v44  ;;  %v4424_v61 = vcombine.low %v394_v42, %v398_v44  ;;  %v433_v27 = vld [vmem:[#allocation5 + $0x9c0] sm:$0xff]  ;;  %v438_v30 = vld [vmem:[#allocation5 + $0x9e8] sm:$0xff] }
  0xcd   :  { %2596 = vmatpush1.bf16.msra.mxu0 %v4366_v53  ;;  %2800 = vmatpush1.bf16.msra.mxu1 %v4368_v54  ;;  %v405_v53 = vld [vmem:[#allocation5 + $0x8e0] sm:$0xff]  ;;  %v402_v54 = vld [vmem:[#allocation5 + $0x8c8] sm:$0xff] }
  0xce   :  { %2597 = vmatprep.subr.bf16.mxu0 %v4375_v55  ;;  %2801 = vmatprep.subr.bf16.mxu1 %v4377_v60  ;;  %v406_v55 = vld [vmem:[#allocation5 + $0x8e8] sm:$0xff]  ;;  %v4422_v60 = vcombine.low %v393_v40, %v397_v41  ;;  %v4430_v5 = vcombine.low %v401_v52, %v405_v53 }
  0xcf   :  { %v446_v40 = vld [vmem:[#allocation5 + $0xa28] sm:$0xff] }
  0xd1   :  { %2598 = vmatpush1.bf16.msra.mxu0 %v4374_v62  ;;  %2802 = vmatpush1.bf16.msra.mxu1 %v4376_v63  ;;  %v4431_v62 = vcombine.high %v401_v52, %v405_v53  ;;  %v4433_v63 = vcombine.high %v402_v54, %v406_v55 }
  0xd2   :  { %2599 = vmatprep.subr.bf16.mxu0 %v4383_v0  ;;  %2803 = vmatprep.subr.bf16.mxu1 %v4385_v4  ;;  %v409_v0 = vld [vmem:[#allocation5 + $0x900] sm:$0xff]  ;;  %v414_v4 = vld [vmem:[#allocation5 + $0x928] sm:$0xff] }
  0xd3   :  { %v4438_v13 = vcombine.low %v409_v0, %v413_v1 }
  0xd5   :  { %2600 = vmatpush1.bf16.msra.mxu0 %v4382_v6  ;;  %2804 = vmatpush1.bf16.msra.mxu1 %v4384_v7  ;;  %v4432_v6 = vcombine.low %v402_v54, %v406_v55  ;;  %v4439_v7 = vcombine.high %v409_v0, %v413_v1  ;;  %v457_v55 = vld [vmem:[#allocation5 + $0xa80] sm:$0xff] }
  0xd6   :  { %2601 = vmatprep.subr.bf16.mxu0 %v4391_v8  ;;  %2805 = vmatprep.subr.bf16.mxu1 %v4393_v12  ;;  %v4441_v8 = vcombine.high %v410_v3, %v414_v4  ;;  %v422_v12 = vld [vmem:[#allocation5 + $0x968] sm:$0xff]  ;;  %v465_v1 = vld [vmem:[#allocation5 + $0xac0] sm:$0xff] }
  0xd7   :  { %v4448_v23 = vcombine.low %v418_v11, %v422_v12 }
  0xd9   :  { %2602 = vmatpush1.bf16.msra.mxu0 %v4390_v15  ;;  %2806 = vmatpush1.bf16.msra.mxu1 %v4392_v17  ;;  %v4440_v15 = vcombine.low %v410_v3, %v414_v4  ;;  %v4449_v17 = vcombine.high %v418_v11, %v422_v12  ;;  %v469_v3 = vld [vmem:[#allocation5 + $0xae0] sm:$0xff]  ;;  %v466_v4 = vld [vmem:[#allocation5 + $0xac8] sm:$0xff] }
  0xda   :  { %2603 = vmatprep.subr.bf16.mxu0 %v4399_v18  ;;  %2807 = vmatprep.subr.bf16.mxu1 %v4401_v22  ;;  %v425_v18 = vld [vmem:[#allocation5 + $0x980] sm:$0xff]  ;;  %v4446_v22 = vcombine.low %v417_v9, %v421_v10  ;;  %v474_v12 = vld [vmem:[#allocation5 + $0xb08] sm:$0xff] }
  0xdb   :  { %v4455_v25 = vcombine.high %v425_v18, %v429_v19  ;;  %v4454_v31 = vcombine.low %v425_v18, %v429_v19  ;;  %v473_v10 = vld [vmem:[#allocation5 + $0xb00] sm:$0xff] }
  0xdc   :  { %v477_v11 = vld [vmem:[#allocation5 + $0xb20] sm:$0xff] }
  0xdd   :  { %2604 = vmatpush1.bf16.msra.mxu0 %v4398_v26  ;;  %2808 = vmatpush1.bf16.msra.mxu1 %v4400_v28  ;;  %v4457_v26 = vcombine.high %v426_v20, %v430_v21  ;;  %v437_v28 = vld [vmem:[#allocation5 + $0x9e0] sm:$0xff]  ;;  %v482_v21 = vld [vmem:[#allocation5 + $0xb48] sm:$0xff] }
  0xde   :  { %2624 = vmatprep.subr.bf16.mxu0 %v4407_v29  ;;  %2828 = vmatprep.subr.bf16.mxu1 %v4409_v33  ;;  %v434_v29 = vld [vmem:[#allocation5 + $0x9c8] sm:$0xff]  ;;  %v4463_v33 = vcombine.high %v433_v27, %v437_v28  ;;  %v4462_v41 = vcombine.low %v433_v27, %v437_v28  ;;  %v481_v19 = vld [vmem:[#allocation5 + $0xb40] sm:$0xff] }
  0xdf   :  { %v4465_v34 = vcombine.high %v434_v29, %v438_v30  ;;  %v4464_v42 = vcombine.low %v434_v29, %v438_v30  ;;  %v485_v20 = vld [vmem:[#allocation5 + $0xb60] sm:$0xff]  ;;  %v490_v30 = vld [vmem:[#allocation5 + $0xb88] sm:$0xff] }
  0xe0   :  { %2606 = vmatmul.mubr.bf16.vlgmr.msra.gmra.mrb[0].mxu0 %v5251_v35  ;;  %2810 = vmatmul.mubr.bf16.vlgmr.msra.gmra.mrb[0].mxu1 %v5251_v35  ;;  %v489_v28 = vld [vmem:[#allocation5 + $0xb80] sm:$0xff] }
  0xe1   :  { %2625 = vmatpush1.bf16.msra.mxu0 %v4406_v36  ;;  %2829 = vmatpush1.bf16.msra.mxu1 %v4408_v38  ;;  %v441_v36 = vld [vmem:[#allocation5 + $0xa00] sm:$0xff] }
  0xe2   :  { %2626 = vmatprep.subr.bf16.mxu0 %v4415_v39  ;;  %2830 = vmatprep.subr.bf16.mxu1 %v4417_v43  ;;  %v445_v38 = vld [vmem:[#allocation5 + $0xa20] sm:$0xff]  ;;  %v442_v39 = vld [vmem:[#allocation5 + $0xa08] sm:$0xff] }
  0xe3   :  { %2615 = vmatprep.mubr.bf16.mxu0 %v5253_v45  ;;  %2819 = vmatprep.mubr.bf16.mxu1 %v5253_v45  ;;  %v4471_v43 = vcombine.high %v441_v36, %v445_v38  ;;  %v4473_v44 = vcombine.high %v442_v39, %v446_v40  ;;  %v4472_v52 = vcombine.low %v442_v39, %v446_v40  ;;  %v493_v29 = vld [vmem:[#allocation5 + $0xba0] sm:$0xff]  ;;  %v498_v40 = vld [vmem:[#allocation5 + $0xbc8] sm:$0xff] }
  0xe4   :  { %v501_v39 = vld [vmem:[#allocation5 + $0xbe0] sm:$0xff] }
  0xe5   :  { %2627 = vmatpush1.bf16.msra.mxu0 %v4414_v46  ;;  %2831 = vmatpush1.bf16.msra.mxu1 %v4416_v49  ;;  %v449_v46 = vld [vmem:[#allocation5 + $0xa40] sm:$0xff]  ;;  %v450_v49 = vld [vmem:[#allocation5 + $0xa48] sm:$0xff] }
  0xe6   :  { %2628 = vmatprep.subr.bf16.mxu0 %v4423_v50  ;;  %2832 = vmatprep.subr.bf16.mxu1 %v4425_v51  ;;  %v454_v50 = vld [vmem:[#allocation5 + $0xa68] sm:$0xff]  ;;  %v4470_v51 = vcombine.low %v441_v36, %v445_v38  ;;  %v4479_v53 = vcombine.high %v449_v46, %v453_v48  ;;  %v497_v38 = vld [vmem:[#allocation5 + $0xbc0] sm:$0xff] }
  0xe7   :  { %v4481_v54 = vcombine.high %v450_v49, %v454_v50 }
  0xe8   :  { %2616 = vmatmul.mubr.bf16.gmra.mrb[4].mxu0 %v5259_v56  ;;  %2820 = vmatmul.mubr.bf16.gmra.mrb[4].mxu1 %v5259_v56 }
  0xe9   :  { %2629 = vmatpush1.bf16.msra.mxu0 %v4422_v60  ;;  %2833 = vmatpush1.bf16.msra.mxu1 %v4424_v61  ;;  %v462_v60 = vld [vmem:[#allocation5 + $0xaa8] sm:$0xff]  ;;  %v4478_v61 = vcombine.low %v449_v46, %v453_v48  ;;  %v505_v48 = vld [vmem:[#allocation5 + $0xc00] sm:$0xff] }
  0xea   :  { %2630 = vmatprep.subr.bf16.mxu0 %v4431_v62  ;;  %2834 = vmatprep.subr.bf16.mxu1 %v4433_v63  ;;  %v4480_v62 = vcombine.low %v450_v49, %v454_v50  ;;  %v4487_v63 = vcombine.high %v457_v55, %v461_v57  ;;  %v4489_v0 = vcombine.high %v458_v59, %v462_v60  ;;  %v509_v49 = vld [vmem:[#allocation5 + $0xc20] sm:$0xff]  ;;  %v506_v50 = vld [vmem:[#allocation5 + $0xc08] sm:$0xff] }
  0xeb   :  { %2656 = vmatprep.mubr.bf16.mxu0 %v5261_v2  ;;  %2860 = vmatprep.mubr.bf16.mxu1 %v5261_v2 }
  0xed   :  { %2631 = vmatpush1.bf16.msra.mxu0 %v4430_v5  ;;  %2835 = vmatpush1.bf16.msra.mxu1 %v4432_v6  ;;  %v470_v5 = vld [vmem:[#allocation5 + $0xae8] sm:$0xff]  ;;  %v4486_v6 = vcombine.low %v457_v55, %v461_v57  ;;  %v4535_v57 = vcombine.high %v505_v48, %v509_v49 }
  0xee   :  { %2632 = vmatprep.subr.bf16.mxu0 %v4439_v7  ;;  %2836 = vmatprep.subr.bf16.mxu1 %v4441_v8  ;;  %v4488_v7 = vcombine.low %v458_v59, %v462_v60  ;;  %v4495_v8 = vcombine.high %v465_v1, %v469_v3  ;;  %v4497_v9 = vcombine.high %v466_v4, %v470_v5  ;;  %v105_v60 = vld [vmem:[#allocation2 + $0x98] sm:$0xff] }
  0xf1   :  { %2633 = vmatpush1.bf16.msra.mxu0 %v4438_v13  ;;  %2837 = vmatpush1.bf16.msra.mxu1 %v4440_v15  ;;  %v478_v13 = vld [vmem:[#allocation5 + $0xb28] sm:$0xff]  ;;  %v4494_v15 = vcombine.low %v465_v1, %v469_v3  ;;  %v124_v1 = vld [vmem:[#allocation5 + $0x18] sm:$0xff] }
  0xf2   :  { %2634 = vmatprep.subr.bf16.mxu0 %v4447_v16  ;;  %2838 = vmatprep.subr.bf16.mxu1 %v4449_v17  ;;  %v4496_v16 = vcombine.low %v466_v4, %v470_v5  ;;  %v4503_v17 = vcombine.high %v473_v10, %v477_v11  ;;  %v4505_v18 = vcombine.high %v474_v12, %v478_v13  ;;  %v128_v3 = vld [vmem:[#allocation5 + $0x38] sm:$0xff] }
  0xf3   :  { %v5269_v5 = vpack.c.bf16 %v105_v60, %v105_v60 }
  0xf5   :  { %2635 = vmatpush1.bf16.msra.mxu0 %v4446_v22  ;;  %2839 = vmatpush1.bf16.msra.mxu1 %v4448_v23  ;;  %v486_v22 = vld [vmem:[#allocation5 + $0xb68] sm:$0xff]  ;;  %v4502_v23 = vcombine.low %v473_v10, %v477_v11  ;;  %v5137_v10 = vmov 0  }
  0xf6   :  { %2636 = vmatprep.subr.bf16.mxu0 %v4455_v25  ;;  %2840 = vmatprep.subr.bf16.mxu1 %v4457_v26  ;;  %v4504_v25 = vcombine.low %v474_v12, %v478_v13  ;;  %v4511_v26 = vcombine.high %v481_v19, %v485_v20  ;;  %v4513_v27 = vcombine.high %v482_v21, %v486_v22  ;;  %v92_v11 = vld [vmem:[#allocation2 + $0x30] sm:$0xff]  ;;  %v99_v12 = vld [vmem:[#allocation2 + $0x68] sm:$0xff]  ;;  %v131_v13 = vld [vmem:[#allocation5 + $0x50] sm:$0xff] }
  0xf9   :  { %2637 = vmatpush1.bf16.msra.mxu0 %v4454_v31  ;;  %2841 = vmatpush1.bf16.msra.mxu1 %v4456_v32  ;;  %v494_v31 = vld [vmem:[#allocation5 + $0xba8] sm:$0xff]  ;;  %v4510_v32 = vcombine.low %v481_v19, %v485_v20  ;;  %v4156_v20 = vcombine.low %v124_v1, %v128_v3 }
  0xfa   :  { %2638 = vmatprep.subr.bf16.mxu0 %v4463_v33  ;;  %2842 = vmatprep.subr.bf16.mxu1 %v4465_v34  ;;  %v4512_v33 = vcombine.low %v482_v21, %v486_v22  ;;  %v4519_v34 = vcombine.high %v489_v28, %v493_v29  ;;  %v4521_v36 = vcombine.high %v490_v30, %v494_v31 }
  0xfd   :  { %2639 = vmatpush1.bf16.msra.mxu0 %v4462_v41  ;;  %2843 = vmatpush1.bf16.msra.mxu1 %v4464_v42  ;;  %v502_v41 = vld [vmem:[#allocation5 + $0xbe8] sm:$0xff]  ;;  %v4518_v42 = vcombine.low %v489_v28, %v493_v29  ;;  %v106_v29 = vld [vmem:[#allocation2 + $0xa0] sm:$0xff] }
  0xfe   :  { %2640 = vmatprep.subr.bf16.mxu0 %v4471_v43  ;;  %2844 = vmatprep.subr.bf16.mxu1 %v4473_v44  ;;  %v4520_v43 = vcombine.low %v490_v30, %v494_v31  ;;  %v4527_v44 = vcombine.high %v497_v38, %v501_v39  ;;  %v4529_v46 = vcombine.high %v498_v40, %v502_v41 }
  0xff   :  { %v4528_v55 = vcombine.low %v498_v40, %v502_v41 }
 0x101   :  { %2641 = vmatpush1.bf16.msra.mxu0 %v4470_v51  ;;  %2845 = vmatpush1.bf16.msra.mxu1 %v4472_v52  ;;  %v510_v51 = vld [vmem:[#allocation5 + $0xc28] sm:$0xff]  ;;  %v4526_v52 = vcombine.low %v497_v38, %v501_v39  ;;  %v148_v38 = vld [vmem:[#allocation5 + $0xd8] sm:$0xff] }
 0x102   :  { %2642 = vmatprep.subr.bf16.mxu0 %v4479_v53  ;;  %2846 = vmatprep.subr.bf16.mxu1 %v4481_v54  ;;  %v90_v53 = vld [vmem:[#allocation2 + $0x20] sm:$0xff]  ;;  %v97_v54 = vld [vmem:[#allocation2 + $0x58] sm:$0xff]  ;;  %v4537_v59 = vcombine.high %v506_v50, %v510_v51  ;;  %v4536_v4 = vcombine.low %v506_v50, %v510_v51 }
 0x103   :  { %v152_v39 = vld [vmem:[#allocation5 + $0xf8] sm:$0xff] }
 0x104   :  { %v4180_v51 = vcombine.low %v148_v38, %v152_v39 }
 0x105   :  { %2643 = vmatpush1.bf16.msra.mxu0 %v4478_v61  ;;  %2847 = vmatpush1.bf16.msra.mxu1 %v4480_v62  ;;  %v5267_v61 = vpack.c.bf16 %v97_v54, %v90_v53  ;;  %v123_v62 = vld [vmem:[#allocation5 + $0x10] sm:$0xff] }
 0x106   :  { %2644 = vmatprep.subr.bf16.mxu0 %v4487_v63  ;;  %2848 = vmatprep.subr.bf16.mxu1 %v4489_v0  ;;  %v127_v63 = vld [vmem:[#allocation5 + $0x30] sm:$0xff]  ;;  %v4534_v0 = vcombine.low %v505_v48, %v509_v49  ;;  %v156_v48 = vld [vmem:[#allocation5 + $0x118] sm:$0xff] }
 0x107   :  { %v4154_v19 = vcombine.low %v123_v62, %v127_v63  ;;  %v160_v49 = vld [vmem:[#allocation5 + $0x138] sm:$0xff]  ;;  %v163_v54 = vld [vmem:[#allocation5 + $0x150] sm:$0xff] }
 0x108   :  { %v4189_v53 = vcombine.high %v156_v48, %v160_v49 }
 0x109   :  { %2645 = vmatpush1.bf16.msra.mxu0 %v4486_v6  ;;  %2849 = vmatpush1.bf16.msra.mxu1 %v4488_v7  ;;  %v4155_v6 = vcombine.high %v123_v62, %v127_v63  ;;  %v4157_v7 = vcombine.high %v124_v1, %v128_v3  ;;  %v4188_v62 = vcombine.low %v156_v48, %v160_v49  ;;  %v171_v1 = vld [vmem:[#allocation5 + $0x190] sm:$0xff] }
 0x10a   :  { %2646 = vmatprep.subr.bf16.mxu0 %v4495_v8  ;;  %2850 = vmatprep.subr.bf16.mxu1 %v4497_v9  ;;  %v104_v8 = vld [vmem:[#allocation2 + $0x90] sm:$0xff]  ;;  %v175_v3 = vld [vmem:[#allocation5 + $0x1b0] sm:$0xff] }
 0x10b   :  { %v5275_v9 = vpack.c.bf16 %v104_v8, %v104_v8 }
 0x10d   :  { %2647 = vmatpush1.bf16.msra.mxu0 %v4494_v15  ;;  %2851 = vmatpush1.bf16.msra.mxu1 %v4496_v16  ;;  %v135_v15 = vld [vmem:[#allocation5 + $0x70] sm:$0xff]  ;;  %v5281_v16 = vpack.c.bf16 %v99_v12, %v92_v11  ;;  %v4203_v11 = vcombine.high %v171_v1, %v175_v3 }
 0x10e   :  { %2648 = vmatprep.subr.bf16.mxu0 %v4503_v17  ;;  %2852 = vmatprep.subr.bf16.mxu1 %v4505_v18  ;;  %v132_v17 = vld [vmem:[#allocation5 + $0x58] sm:$0xff]  ;;  %v4163_v21 = vcombine.high %v131_v13, %v135_v15  ;;  %v4162_v28 = vcombine.low %v131_v13, %v135_v15  ;;  %v179_v12 = vld [vmem:[#allocation5 + $0x1d0] sm:$0xff] }
 0x10f   :  { %v136_v18 = vld [vmem:[#allocation5 + $0x78] sm:$0xff]  ;;  %v183_v13 = vld [vmem:[#allocation5 + $0x1f0] sm:$0xff] }
 0x110   :  { %v4165_v22 = vcombine.high %v132_v17, %v136_v18  ;;  %v4164_v30 = vcombine.low %v132_v17, %v136_v18  ;;  %v180_v15 = vld [vmem:[#allocation5 + $0x1d8] sm:$0xff]  ;;  %v4202_v18 = vcombine.low %v171_v1, %v175_v3 }
 0x111   :  { %2649 = vmatpush1.bf16.msra.mxu0 %v4502_v23  ;;  %2853 = vmatpush1.bf16.msra.mxu1 %v4504_v25  ;;  %v139_v23 = vld [vmem:[#allocation5 + $0x90] sm:$0xff]  ;;  %v184_v17 = vld [vmem:[#allocation5 + $0x1f8] sm:$0xff] }
 0x112   :  { %2650 = vmatprep.subr.bf16.mxu0 %v4511_v26  ;;  %2854 = vmatprep.subr.bf16.mxu1 %v4513_v27  ;;  %v143_v25 = vld [vmem:[#allocation5 + $0xb0] sm:$0xff]  ;;  %v140_v26 = vld [vmem:[#allocation5 + $0x98] sm:$0xff] }
 0x113   :  { %v144_v27 = vld [vmem:[#allocation5 + $0xb8] sm:$0xff]  ;;  %v4171_v31 = vcombine.high %v139_v23, %v143_v25  ;;  %v4170_v40 = vcombine.low %v139_v23, %v143_v25  ;;  %v191_v23 = vld [vmem:[#allocation5 + $0x230] sm:$0xff] }
 0x114   :  { %v4172_v41 = vcombine.low %v140_v26, %v144_v27  ;;  %v188_v25 = vld [vmem:[#allocation5 + $0x218] sm:$0xff] }
 0x115   :  { %2651 = vmatpush1.bf16.msra.mxu0 %v4510_v32  ;;  %2855 = vmatpush1.bf16.msra.mxu1 %v4512_v33  ;;  %v4173_v32 = vcombine.high %v140_v26, %v144_v27  ;;  %v147_v33 = vld [vmem:[#allocation5 + $0xd0] sm:$0xff]  ;;  %v192_v26 = vld [vmem:[#allocation5 + $0x238] sm:$0xff]  ;;  %v4210_v27 = vcombine.low %v179_v12, %v183_v13 }
 0x116   :  { %2652 = vmatprep.subr.bf16.mxu0 %v4519_v34  ;;  %2856 = vmatprep.subr.bf16.mxu1 %v4521_v36  ;;  %v151_v34 = vld [vmem:[#allocation5 + $0xf0] sm:$0xff]  ;;  %v5289_v36 = vpack.c.bf16 %v106_v29, %v106_v29  ;;  %v220_v1 = vld [vmem:[#allocation5 + $0x318] sm:$0xff] }
 0x117   :  { %v4178_v50 = vcombine.low %v147_v33, %v151_v34  ;;  %v224_v3 = vld [vmem:[#allocation5 + $0x338] sm:$0xff] }
 0x119   :  { %2653 = vmatpush1.bf16.msra.mxu0 %v4518_v42  ;;  %2857 = vmatpush1.bf16.msra.mxu1 %v4520_v43  ;;  %v4179_v42 = vcombine.high %v147_v33, %v151_v34  ;;  %v4181_v43 = vcombine.high %v148_v38, %v152_v39  ;;  %v196_v33 = vld [vmem:[#allocation5 + $0x258] sm:$0xff]  ;;  %v4220_v39 = vcombine.low %v188_v25, %v192_v26 }
 0x11a   :  { %2654 = vmatprep.subr.bf16.mxu0 %v4527_v44  ;;  %2858 = vmatprep.subr.bf16.mxu1 %v4529_v46  ;;  %v155_v44 = vld [vmem:[#allocation5 + $0x110] sm:$0xff]  ;;  %v200_v34 = vld [vmem:[#allocation5 + $0x278] sm:$0xff] }
 0x11b   :  { %v159_v46 = vld [vmem:[#allocation5 + $0x130] sm:$0xff]  ;;  %v4228_v49 = vcombine.low %v196_v33, %v200_v34 }
 0x11c   :  { %v4186_v60 = vcombine.low %v155_v44, %v159_v46 }
 0x11d   :  { %2655 = vmatpush1.bf16.msra.mxu0 %v4526_v52  ;;  %2859 = vmatpush1.bf16.msra.mxu1 %v4528_v55  ;;  %v4187_v52 = vcombine.high %v155_v44, %v159_v46  ;;  %v167_v55 = vld [vmem:[#allocation5 + $0x170] sm:$0xff]  ;;  %v204_v44 = vld [vmem:[#allocation5 + $0x298] sm:$0xff] }
 0x11e   :  { %2675 = vmatprep.subr.bf16.mxu0 %v4535_v57  ;;  %2879 = vmatprep.subr.bf16.mxu1 %v4537_v59  ;;  %v164_v57 = vld [vmem:[#allocation5 + $0x158] sm:$0xff]  ;;  %v4195_v63 = vcombine.high %v163_v54, %v167_v55 }
 0x11f   :  { %v168_v59 = vld [vmem:[#allocation5 + $0x178] sm:$0xff] }
 0x120   :  { %2657 = vmatmul.mubr.bf16.vlgmr.msra.gmra.mrb[0].mxu0 %v5267_v61  ;;  %2861 = vmatmul.mubr.bf16.vlgmr.msra.gmra.mrb[0].mxu1 %v5267_v61  ;;  %v4196_v8 = vcombine.low %v164_v57, %v168_v59  ;;  %v208_v46 = vld [vmem:[#allocation5 + $0x2b8] sm:$0xff] }
 0x121   :  { %2676 = vmatpush1.bf16.msra.mxu0 %v4534_v0  ;;  %2880 = vmatpush1.bf16.msra.mxu1 %v4536_v4  ;;  %v4197_v0 = vcombine.high %v164_v57, %v168_v59  ;;  %v172_v4 = vld [vmem:[#allocation5 + $0x198] sm:$0xff]  ;;  %v4236_v59 = vcombine.low %v204_v44, %v208_v46 }
 0x122   :  { %2666 = vmatprep.mubr.bf16.mxu0 %v5269_v5  ;;  %2870 = vmatprep.mubr.bf16.mxu1 %v5269_v5 }
 0x123   :  { %2930 = vmatprep.subr.bf16.mxu0 %v4155_v6  ;;  %3134 = vmatprep.subr.bf16.mxu1 %v4157_v7  ;;  %v176_v6 = vld [vmem:[#allocation5 + $0x1b8] sm:$0xff]  ;;  %v4194_v7 = vcombine.low %v163_v54, %v167_v55 }
 0x124   :  { %v212_v54 = vld [vmem:[#allocation5 + $0x2d8] sm:$0xff] }
 0x125   :  { %v216_v55 = vld [vmem:[#allocation5 + $0x2f8] sm:$0xff] }
 0x128   :  { %2667 = vmatmul.mubr.bf16.gmra.mrb[4].mxu0 %v5275_v9  ;;  %2871 = vmatmul.mubr.bf16.gmra.mrb[4].mxu1 %v5275_v9 }
 0x129   :  { %2707 = vmatprep.mubr.bf16.mxu0 %v5137_v10  ;;  %2911 = vmatprep.mubr.bf16.mxu1 %v5137_v10 }
 0x130   :  { %4542 = vmatmul.mubr.msk.bf16.vlgmr.msra.gmra.mrb[0].mxu0 %vm2515_vm0, %v5281_v16  ;;  %4544 = vmatmul.mubr.msk.bf16.vlgmr.msra.gmra.mrb[0].mxu1 %vm2515_vm0, %v5281_v16 }
 0x131   :  { %2931 = vmatpush1.bf16.msra.mxu0 %v4154_v19  ;;  %3135 = vmatpush1.bf16.msra.mxu1 %v4156_v20  ;;  %v4204_v19 = vcombine.low %v172_v4, %v176_v6  ;;  %v4211_v20 = vcombine.high %v179_v12, %v183_v13  ;;  %v228_v12 = vld [vmem:[#allocation5 + $0x358] sm:$0xff] }
 0x132   :  { %2932 = vmatprep.subr.bf16.mxu0 %v4163_v21  ;;  %3136 = vmatprep.subr.bf16.mxu1 %v4165_v22  ;;  %v4213_v21 = vcombine.high %v180_v15, %v184_v17  ;;  %v187_v22 = vld [vmem:[#allocation5 + $0x210] sm:$0xff]  ;;  %v232_v13 = vld [vmem:[#allocation5 + $0x378] sm:$0xff] }
 0x133   :  { %2717 = vmatprep.mubr.bf16.mxu0 %v5137_v10  ;;  %2921 = vmatprep.mubr.bf16.mxu1 %v5137_v10  ;;  %v4219_v29 = vcombine.high %v187_v22, %v191_v23  ;;  %v4218_v38 = vcombine.low %v187_v22, %v191_v23  ;;  %v236_v22 = vld [vmem:[#allocation5 + $0x398] sm:$0xff] }
 0x134   :  { %v240_v23 = vld [vmem:[#allocation5 + $0x3b8] sm:$0xff] }
 0x135   :  { %2933 = vmatpush1.bf16.msra.mxu0 %v4162_v28  ;;  %3137 = vmatpush1.bf16.msra.mxu1 %v4164_v30  ;;  %v4212_v28 = vcombine.low %v180_v15, %v184_v17  ;;  %v4221_v30 = vcombine.high %v188_v25, %v192_v26  ;;  %v4252_v17 = vcombine.low %v220_v1, %v224_v3 }
 0x136   :  { %2934 = vmatprep.subr.bf16.mxu0 %v4171_v31  ;;  %3138 = vmatprep.subr.bf16.mxu1 %v4173_v32  ;;  %v195_v31 = vld [vmem:[#allocation5 + $0x250] sm:$0xff]  ;;  %v4260_v26 = vcombine.low %v228_v12, %v232_v13 }
 0x137   :  { %v199_v32 = vld [vmem:[#allocation5 + $0x270] sm:$0xff] }
 0x138   :  { %4543 = vmatmul.mubr.msk.bf16.gmra.mrb[4].mxu0 %vm2515_vm0, %v5289_v36  ;;  %4545 = vmatmul.mubr.msk.bf16.gmra.mrb[4].mxu1 %vm2515_vm0, %v5289_v36  ;;  %v4226_v48 = vcombine.low %v195_v31, %v199_v32 }
 0x139   :  { %2935 = vmatpush1.bf16.msra.mxu0 %v4170_v40  ;;  %3139 = vmatpush1.bf16.msra.mxu1 %v4172_v41  ;;  %v4227_v40 = vcombine.high %v195_v31, %v199_v32  ;;  %v4229_v41 = vcombine.high %v196_v33, %v200_v34  ;;  %v244_v31 = vld [vmem:[#allocation5 + $0x3d8] sm:$0xff]  ;;  %v4268_v34 = vcombine.low %v236_v22, %v240_v23 }
 0x13a   :  { %2936 = vmatprep.subr.bf16.mxu0 %v4179_v42  ;;  %3140 = vmatprep.subr.bf16.mxu1 %v4181_v43  ;;  %v203_v42 = vld [vmem:[#allocation5 + $0x290] sm:$0xff]  ;;  %v248_v32 = vld [vmem:[#allocation5 + $0x3f8] sm:$0xff] }
 0x13b   :  { %2962 = vmatprep.mubr.bf16.mxu0 %v5231_v58  ;;  %3166 = vmatprep.mubr.bf16.mxu1 %v5231_v58  ;;  %v4205_v58 = vcombine.high %v172_v4, %v176_v6  ;;  %v207_v43 = vld [vmem:[#allocation5 + $0x2b0] sm:$0xff]  ;;  %v4244_v6 = vcombine.low %v212_v54, %v216_v55 }
 0x13c   :  { %v4234_v57 = vcombine.low %v203_v42, %v207_v43 }
 0x13d   :  { %2937 = vmatpush1.bf16.msra.mxu0 %v4178_v50  ;;  %3141 = vmatpush1.bf16.msra.mxu1 %v4180_v51  ;;  %v4235_v50 = vcombine.high %v203_v42, %v207_v43  ;;  %v4237_v51 = vcombine.high %v204_v44, %v208_v46  ;;  %v252_v42 = vld [vmem:[#allocation5 + $0x418] sm:$0xff]  ;;  %v4276_v46 = vcombine.low %v244_v31, %v248_v32 }
 0x13e   :  { %2938 = vmatprep.subr.bf16.mxu0 %v4187_v52  ;;  %3142 = vmatprep.subr.bf16.mxu1 %v4189_v53  ;;  %v211_v52 = vld [vmem:[#allocation5 + $0x2d0] sm:$0xff]  ;;  %v256_v43 = vld [vmem:[#allocation5 + $0x438] sm:$0xff] }
 0x13f   :  { %v215_v53 = vld [vmem:[#allocation5 + $0x2f0] sm:$0xff] }
 0x140   :  { %v4242_v4 = vcombine.low %v211_v52, %v215_v53 }
 0x141   :  { %2939 = vmatpush1.bf16.msra.mxu0 %v4186_v60  ;;  %3143 = vmatpush1.bf16.msra.mxu1 %v4188_v62  ;;  %v4243_v60 = vcombine.high %v211_v52, %v215_v53  ;;  %v4245_v62 = vcombine.high %v212_v54, %v216_v55  ;;  %v260_v52 = vld [vmem:[#allocation5 + $0x458] sm:$0xff]  ;;  %v4284_v55 = vcombine.low %v252_v42, %v256_v43 }
 0x142   :  { %2940 = vmatprep.subr.bf16.mxu0 %v4195_v63  ;;  %3144 = vmatprep.subr.bf16.mxu1 %v4197_v0  ;;  %v219_v63 = vld [vmem:[#allocation5 + $0x310] sm:$0xff]  ;;  %v264_v53 = vld [vmem:[#allocation5 + $0x478] sm:$0xff] }
 0x143   :  { %v223_v0 = vld [vmem:[#allocation5 + $0x330] sm:$0xff] }
 0x144   :  { %v4250_v15 = vcombine.low %v219_v63, %v223_v0 }
 0x145   :  { %2941 = vmatpush1.bf16.msra.mxu0 %v4194_v7  ;;  %3145 = vmatpush1.bf16.msra.mxu1 %v4196_v8  ;;  %v4251_v7 = vcombine.high %v219_v63, %v223_v0  ;;  %v4253_v8 = vcombine.high %v220_v1, %v224_v3  ;;  %v268_v63 = vld [vmem:[#allocation5 + $0x498] sm:$0xff]  ;;  %v4292_v3 = vcombine.low %v260_v52, %v264_v53 }
 0x146   :  { %2942 = vmatprep.subr.bf16.mxu0 %v4203_v11  ;;  %3146 = vmatprep.subr.bf16.mxu1 %v4205_v58  ;;  %v227_v11 = vld [vmem:[#allocation5 + $0x350] sm:$0xff]  ;;  %v272_v0 = vld [vmem:[#allocation5 + $0x4b8] sm:$0xff] }
 0x147   :  { %v231_v58 = vld [vmem:[#allocation5 + $0x370] sm:$0xff] }
 0x148   :  { %v4258_v25 = vcombine.low %v227_v11, %v231_v58 }
 0x149   :  { %2943 = vmatpush1.bf16.msra.mxu0 %v4202_v18  ;;  %3147 = vmatpush1.bf16.msra.mxu1 %v4204_v19  ;;  %v4259_v18 = vcombine.high %v227_v11, %v231_v58  ;;  %v4261_v19 = vcombine.high %v228_v12, %v232_v13  ;;  %v276_v11 = vld [vmem:[#allocation5 + $0x4d8] sm:$0xff] }
 0x14a   :  { %2944 = vmatprep.subr.bf16.mxu0 %v4211_v20  ;;  %3148 = vmatprep.subr.bf16.mxu1 %v4213_v21  ;;  %v235_v20 = vld [vmem:[#allocation5 + $0x390] sm:$0xff]  ;;  %v280_v58 = vld [vmem:[#allocation5 + $0x4f8] sm:$0xff] }
 0x14b   :  { %v239_v21 = vld [vmem:[#allocation5 + $0x3b0] sm:$0xff] }
 0x14c   :  { %v4266_v33 = vcombine.low %v235_v20, %v239_v21 }
 0x14d   :  { %2945 = vmatpush1.bf16.msra.mxu0 %v4210_v27  ;;  %3149 = vmatpush1.bf16.msra.mxu1 %v4212_v28  ;;  %v4267_v27 = vcombine.high %v235_v20, %v239_v21  ;;  %v4269_v28 = vcombine.high %v236_v22, %v240_v23  ;;  %v288_v20 = vld [vmem:[#allocation5 + $0x538] sm:$0xff] }
 0x14e   :  { %2946 = vmatprep.subr.bf16.mxu0 %v4219_v29  ;;  %3150 = vmatprep.subr.bf16.mxu1 %v4221_v30  ;;  %v243_v29 = vld [vmem:[#allocation5 + $0x3d0] sm:$0xff] }
 0x14f   :  { %v247_v30 = vld [vmem:[#allocation5 + $0x3f0] sm:$0xff] }
 0x150   :  { %v4274_v44 = vcombine.low %v243_v29, %v247_v30 }
 0x151   :  { %2947 = vmatpush1.bf16.msra.mxu0 %v4218_v38  ;;  %3151 = vmatpush1.bf16.msra.mxu1 %v4220_v39  ;;  %v4275_v38 = vcombine.high %v243_v29, %v247_v30  ;;  %v4277_v39 = vcombine.high %v244_v31, %v248_v32  ;;  %v299_v32 = vld [vmem:[#allocation5 + $0x590] sm:$0xff] }
 0x152   :  { %2948 = vmatprep.subr.bf16.mxu0 %v4227_v40  ;;  %3152 = vmatprep.subr.bf16.mxu1 %v4229_v41  ;;  %v251_v40 = vld [vmem:[#allocation5 + $0x410] sm:$0xff] }
 0x153   :  { %v255_v41 = vld [vmem:[#allocation5 + $0x430] sm:$0xff] }
 0x154   :  { %v4282_v54 = vcombine.low %v251_v40, %v255_v41 }
 0x155   :  { %2949 = vmatpush1.bf16.msra.mxu0 %v4226_v48  ;;  %3153 = vmatpush1.bf16.msra.mxu1 %v4228_v49  ;;  %v4283_v48 = vcombine.high %v251_v40, %v255_v41  ;;  %v4285_v49 = vcombine.high %v252_v42, %v256_v43  ;;  %v307_v42 = vld [vmem:[#allocation5 + $0x5d0] sm:$0xff] }
 0x156   :  { %2950 = vmatprep.subr.bf16.mxu0 %v4235_v50  ;;  %3154 = vmatprep.subr.bf16.mxu1 %v4237_v51  ;;  %v259_v50 = vld [vmem:[#allocation5 + $0x450] sm:$0xff] }
 0x157   :  { %v263_v51 = vld [vmem:[#allocation5 + $0x470] sm:$0xff] }
 0x158   :  { %v4290_v1 = vcombine.low %v259_v50, %v263_v51  ;;  %v311_v43 = vld [vmem:[#allocation5 + $0x5f0] sm:$0xff] }
 0x159   :  { %2951 = vmatpush1.bf16.msra.mxu0 %v4234_v57  ;;  %3155 = vmatpush1.bf16.msra.mxu1 %v4236_v59  ;;  %v4291_v57 = vcombine.high %v259_v50, %v263_v51  ;;  %v4293_v59 = vcombine.high %v260_v52, %v264_v53  ;;  %v4339_v50 = vcombine.high %v307_v42, %v311_v43  ;;  %v315_v52 = vld [vmem:[#allocation5 + $0x610] sm:$0xff] }
 0x15a   :  { %2952 = vmatprep.subr.bf16.mxu0 %v4243_v60  ;;  %3156 = vmatprep.subr.bf16.mxu1 %v4245_v62  ;;  %v267_v60 = vld [vmem:[#allocation5 + $0x490] sm:$0xff] }
 0x15b   :  { %v271_v62 = vld [vmem:[#allocation5 + $0x4b0] sm:$0xff] }
 0x15c   :  { %v4298_v12 = vcombine.low %v267_v60, %v271_v62  ;;  %v319_v53 = vld [vmem:[#allocation5 + $0x630] sm:$0xff] }
 0x15d   :  { %2953 = vmatpush1.bf16.msra.mxu0 %v4242_v4  ;;  %3157 = vmatpush1.bf16.msra.mxu1 %v4244_v6  ;;  %v4299_v4 = vcombine.high %v267_v60, %v271_v62  ;;  %v4301_v6 = vcombine.high %v268_v63, %v272_v0  ;;  %v4347_v60 = vcombine.high %v315_v52, %v319_v53 }
 0x15e   :  { %2954 = vmatprep.subr.bf16.mxu0 %v4251_v7  ;;  %3158 = vmatprep.subr.bf16.mxu1 %v4253_v8  ;;  %v275_v7 = vld [vmem:[#allocation5 + $0x4d0] sm:$0xff] }
 0x15f   :  { %v279_v8 = vld [vmem:[#allocation5 + $0x4f0] sm:$0xff] }
 0x160   :  { %v4307_v13 = vcombine.high %v275_v7, %v279_v8  ;;  %v4306_v21 = vcombine.low %v275_v7, %v279_v8 }
 0x161   :  { %2955 = vmatpush1.bf16.msra.mxu0 %v4250_v15  ;;  %3159 = vmatpush1.bf16.msra.mxu1 %v4252_v17  ;;  %v4309_v15 = vcombine.high %v276_v11, %v280_v58  ;;  %v283_v17 = vld [vmem:[#allocation5 + $0x510] sm:$0xff] }
 0x162   :  { %2956 = vmatprep.subr.bf16.mxu0 %v4259_v18  ;;  %3160 = vmatprep.subr.bf16.mxu1 %v4261_v19  ;;  %v287_v18 = vld [vmem:[#allocation5 + $0x530] sm:$0xff]  ;;  %v284_v19 = vld [vmem:[#allocation5 + $0x518] sm:$0xff] }
 0x163   :  { %v4315_v22 = vcombine.high %v283_v17, %v287_v18  ;;  %v4317_v23 = vcombine.high %v284_v19, %v288_v20  ;;  %v4314_v29 = vcombine.low %v283_v17, %v287_v18  ;;  %v4316_v30 = vcombine.low %v284_v19, %v288_v20  ;;  %v339_v19 = vld [vmem:[#allocation5 + $0x6d0] sm:$0xff] }
 0x164   :  { %v343_v20 = vld [vmem:[#allocation5 + $0x6f0] sm:$0xff] }
 0x165   :  { %2957 = vmatpush1.bf16.msra.mxu0 %v4258_v25  ;;  %3161 = vmatpush1.bf16.msra.mxu1 %v4260_v26  ;;  %v291_v25 = vld [vmem:[#allocation5 + $0x550] sm:$0xff] }
 0x166   :  { %2958 = vmatprep.subr.bf16.mxu0 %v4267_v27  ;;  %3162 = vmatprep.subr.bf16.mxu1 %v4269_v28  ;;  %v295_v26 = vld [vmem:[#allocation5 + $0x570] sm:$0xff]  ;;  %v292_v27 = vld [vmem:[#allocation5 + $0x558] sm:$0xff] }
 0x167   :  { %v296_v28 = vld [vmem:[#allocation5 + $0x578] sm:$0xff] }
 0x168   :  { %v4325_v31 = vcombine.high %v292_v27, %v296_v28  ;;  %v4324_v40 = vcombine.low %v292_v27, %v296_v28  ;;  %v347_v27 = vld [vmem:[#allocation5 + $0x710] sm:$0xff] }
 0x169   :  { %2959 = vmatpush1.bf16.msra.mxu0 %v4266_v33  ;;  %3163 = vmatpush1.bf16.msra.mxu1 %v4268_v34  ;;  %v303_v33 = vld [vmem:[#allocation5 + $0x5b0] sm:$0xff]  ;;  %v300_v34 = vld [vmem:[#allocation5 + $0x598] sm:$0xff] }
 0x16a   :  { %2960 = vmatprep.subr.bf16.mxu0 %v4275_v38  ;;  %3164 = vmatprep.subr.bf16.mxu1 %v4277_v39  ;;  %v304_v38 = vld [vmem:[#allocation5 + $0x5b8] sm:$0xff]  ;;  %v4322_v39 = vcombine.low %v291_v25, %v295_v26  ;;  %v4331_v41 = vcombine.high %v299_v32, %v303_v33  ;;  %v351_v28 = vld [vmem:[#allocation5 + $0x730] sm:$0xff] }
 0x16d   :  { %2961 = vmatpush1.bf16.msra.mxu0 %v4274_v44  ;;  %3165 = vmatpush1.bf16.msra.mxu1 %v4276_v46  ;;  %v308_v44 = vld [vmem:[#allocation5 + $0x5d8] sm:$0xff] }
 0x16e   :  { %2981 = vmatprep.subr.bf16.mxu0 %v4283_v48  ;;  %3185 = vmatprep.subr.bf16.mxu1 %v4285_v49  ;;  %v312_v46 = vld [vmem:[#allocation5 + $0x5f8] sm:$0xff]  ;;  %v4330_v48 = vcombine.low %v299_v32, %v303_v33  ;;  %v4332_v49 = vcombine.low %v300_v34, %v304_v38  ;;  %v4379_v32 = vcombine.high %v347_v27, %v351_v28 }
 0x16f   :  { %v4341_v51 = vcombine.high %v308_v44, %v312_v46 }
 0x170   :  { %2963 = vmatmul.mubr.bf16.vlgmr.msra.gmra.mrb[8].mxu0 %v5235_v14  ;;  %3167 = vmatmul.mubr.bf16.vlgmr.msra.gmra.mrb[8].mxu1 %v5235_v14  ;;  %v4300_v14 = vcombine.low %v268_v63, %v272_v0  ;;  %v323_v63 = vld [vmem:[#allocation5 + $0x650] sm:$0xff] }
 0x171   :  { %2982 = vmatpush1.bf16.msra.mxu0 %v4282_v54  ;;  %3186 = vmatpush1.bf16.msra.mxu1 %v4284_v55  ;;  %v316_v54 = vld [vmem:[#allocation5 + $0x618] sm:$0xff]  ;;  %v327_v0 = vld [vmem:[#allocation5 + $0x670] sm:$0xff] }
 0x172   :  { %2983 = vmatprep.subr.bf16.mxu0 %v4291_v57  ;;  %3187 = vmatprep.subr.bf16.mxu1 %v4293_v59  ;;  %v320_v55 = vld [vmem:[#allocation5 + $0x638] sm:$0xff]  ;;  %v4338_v57 = vcombine.low %v307_v42, %v311_v43  ;;  %v4340_v59 = vcombine.low %v308_v44, %v312_v46  ;;  %v4355_v7 = vcombine.high %v323_v63, %v327_v0  ;;  %v363_v44 = vld [vmem:[#allocation5 + $0x790] sm:$0xff] }
 0x173   :  { %2972 = vmatprep.mubr.bf16.mxu0 %v5237_v24  ;;  %3176 = vmatprep.mubr.bf16.mxu1 %v5237_v24  ;;  %v4308_v24 = vcombine.low %v276_v11, %v280_v58  ;;  %v4349_v62 = vcombine.high %v316_v54, %v320_v55  ;;  %v331_v11 = vld [vmem:[#allocation5 + $0x690] sm:$0xff] }
 0x174   :  { %v335_v58 = vld [vmem:[#allocation5 + $0x6b0] sm:$0xff] }
 0x175   :  { %2984 = vmatpush1.bf16.msra.mxu0 %v4290_v1  ;;  %3188 = vmatpush1.bf16.msra.mxu1 %v4292_v3  ;;  %v324_v1 = vld [vmem:[#allocation5 + $0x658] sm:$0xff]  ;;  %v4363_v17 = vcombine.high %v331_v11, %v335_v58  ;;  %v367_v46 = vld [vmem:[#allocation5 + $0x7b0] sm:$0xff] }
 0x176   :  { %2985 = vmatprep.subr.bf16.mxu0 %v4299_v4  ;;  %3189 = vmatprep.subr.bf16.mxu1 %v4301_v6  ;;  %v328_v3 = vld [vmem:[#allocation5 + $0x678] sm:$0xff]  ;;  %v4346_v4 = vcombine.low %v315_v52, %v319_v53  ;;  %v4348_v6 = vcombine.low %v316_v54, %v320_v55  ;;  %v4395_v52 = vcombine.high %v363_v44, %v367_v46  ;;  %v371_v54 = vld [vmem:[#allocation5 + $0x7d0] sm:$0xff] }
 0x177   :  { %v4357_v8 = vcombine.high %v324_v1, %v328_v3  ;;  %v375_v55 = vld [vmem:[#allocation5 + $0x7f0] sm:$0xff] }
 0x178   :  { %2973 = vmatmul.mubr.bf16.gmra.mrb[12].mxu0 %v5243_v37  ;;  %3177 = vmatmul.mubr.bf16.gmra.mrb[12].mxu1 %v5243_v37  ;;  %v4323_v37 = vcombine.high %v291_v25, %v295_v26  ;;  %v4371_v25 = vcombine.high %v339_v19, %v343_v20 }
 0x179   :  { %2986 = vmatpush1.bf16.msra.mxu0 %v4298_v12  ;;  %3190 = vmatpush1.bf16.msra.mxu1 %v4300_v14  ;;  %v332_v12 = vld [vmem:[#allocation5 + $0x698] sm:$0xff] }
 0x17a   :  { %2987 = vmatprep.subr.bf16.mxu0 %v4307_v13  ;;  %3191 = vmatprep.subr.bf16.mxu1 %v4309_v15  ;;  %v336_v14 = vld [vmem:[#allocation5 + $0x6b8] sm:$0xff]  ;;  %v4354_v13 = vcombine.low %v323_v63, %v327_v0  ;;  %v4356_v15 = vcombine.low %v324_v1, %v328_v3  ;;  %v4403_v63 = vcombine.high %v371_v54, %v375_v55  ;;  %v379_v1 = vld [vmem:[#allocation5 + $0x810] sm:$0xff] }
 0x17b   :  { %3013 = vmatprep.mubr.bf16.mxu0 %v5245_v47  ;;  %3217 = vmatprep.mubr.bf16.mxu1 %v5245_v47  ;;  %v4333_v47 = vcombine.high %v300_v34, %v304_v38  ;;  %v4365_v18 = vcombine.high %v332_v12, %v336_v14  ;;  %v355_v34 = vld [vmem:[#allocation5 + $0x750] sm:$0xff] }
 0x17c   :  { %v359_v38 = vld [vmem:[#allocation5 + $0x770] sm:$0xff] }
 0x17d   :  { %2988 = vmatpush1.bf16.msra.mxu0 %v4306_v21  ;;  %3192 = vmatpush1.bf16.msra.mxu1 %v4308_v24  ;;  %v340_v21 = vld [vmem:[#allocation5 + $0x6d8] sm:$0xff]  ;;  %v4387_v42 = vcombine.high %v355_v34, %v359_v38  ;;  %v383_v3 = vld [vmem:[#allocation5 + $0x830] sm:$0xff] }
 0x17e   :  { %2989 = vmatprep.subr.bf16.mxu0 %v4315_v22  ;;  %3193 = vmatprep.subr.bf16.mxu1 %v4317_v23  ;;  %v344_v24 = vld [vmem:[#allocation5 + $0x6f8] sm:$0xff]  ;;  %v4362_v22 = vcombine.low %v331_v11, %v335_v58  ;;  %v4364_v23 = vcombine.low %v332_v12, %v336_v14  ;;  %v4411_v11 = vcombine.high %v379_v1, %v383_v3  ;;  %v387_v12 = vld [vmem:[#allocation5 + $0x850] sm:$0xff] }
 0x17f   :  { %v4373_v26 = vcombine.high %v340_v21, %v344_v24  ;;  %v391_v14 = vld [vmem:[#allocation5 + $0x870] sm:$0xff] }
 0x181   :  { %2990 = vmatpush1.bf16.msra.mxu0 %v4314_v29  ;;  %3194 = vmatpush1.bf16.msra.mxu1 %v4316_v30  ;;  %v348_v29 = vld [vmem:[#allocation5 + $0x718] sm:$0xff] }
 0x182   :  { %2991 = vmatprep.subr.bf16.mxu0 %v4323_v37  ;;  %3195 = vmatprep.subr.bf16.mxu1 %v4325_v31  ;;  %v352_v30 = vld [vmem:[#allocation5 + $0x738] sm:$0xff]  ;;  %v4370_v37 = vcombine.low %v339_v19, %v343_v20  ;;  %v4372_v31 = vcombine.low %v340_v21, %v344_v24  ;;  %v4419_v19 = vcombine.high %v387_v12, %v391_v14  ;;  %v395_v21 = vld [vmem:[#allocation5 + $0x890] sm:$0xff] }
 0x183   :  { %v4381_v33 = vcombine.high %v348_v29, %v352_v30  ;;  %v399_v24 = vld [vmem:[#allocation5 + $0x8b0] sm:$0xff] }
 0x185   :  { %2992 = vmatpush1.bf16.msra.mxu0 %v4322_v39  ;;  %3196 = vmatpush1.bf16.msra.mxu1 %v4324_v40  ;;  %v356_v39 = vld [vmem:[#allocation5 + $0x758] sm:$0xff] }
 0x186   :  { %2993 = vmatprep.subr.bf16.mxu0 %v4331_v41  ;;  %3197 = vmatprep.subr.bf16.mxu1 %v4333_v47  ;;  %v360_v40 = vld [vmem:[#allocation5 + $0x778] sm:$0xff]  ;;  %v4378_v41 = vcombine.low %v347_v27, %v351_v28  ;;  %v4380_v47 = vcombine.low %v348_v29, %v352_v30  ;;  %v4427_v27 = vcombine.high %v395_v21, %v399_v24  ;;  %v403_v29 = vld [vmem:[#allocation5 + $0x8d0] sm:$0xff] }
 0x187   :  { %v4389_v43 = vcombine.high %v356_v39, %v360_v40  ;;  %v407_v30 = vld [vmem:[#allocation5 + $0x8f0] sm:$0xff] }
 0x189   :  { %2994 = vmatpush1.bf16.msra.mxu0 %v4330_v48  ;;  %3198 = vmatpush1.bf16.msra.mxu1 %v4332_v49  ;;  %v364_v48 = vld [vmem:[#allocation5 + $0x798] sm:$0xff] }
 0x18a   :  { %2995 = vmatprep.subr.bf16.mxu0 %v4339_v50  ;;  %3199 = vmatprep.subr.bf16.mxu1 %v4341_v51  ;;  %v368_v49 = vld [vmem:[#allocation5 + $0x7b8] sm:$0xff]  ;;  %v4386_v50 = vcombine.low %v355_v34, %v359_v38  ;;  %v4388_v51 = vcombine.low %v356_v39, %v360_v40  ;;  %v411_v38 = vld [vmem:[#allocation5 + $0x910] sm:$0xff] }
 0x18b   :  { %v4397_v53 = vcombine.high %v364_v48, %v368_v49  ;;  %v415_v39 = vld [vmem:[#allocation5 + $0x930] sm:$0xff]  ;;  %v412_v40 = vld [vmem:[#allocation5 + $0x918] sm:$0xff] }
 0x18d   :  { %2996 = vmatpush1.bf16.msra.mxu0 %v4338_v57  ;;  %3200 = vmatpush1.bf16.msra.mxu1 %v4340_v59  ;;  %v372_v57 = vld [vmem:[#allocation5 + $0x7d8] sm:$0xff] }
 0x18e   :  { %2997 = vmatprep.subr.bf16.mxu0 %v4347_v60  ;;  %3201 = vmatprep.subr.bf16.mxu1 %v4349_v62  ;;  %v376_v59 = vld [vmem:[#allocation5 + $0x7f8] sm:$0xff]  ;;  %v4394_v60 = vcombine.low %v363_v44, %v367_v46  ;;  %v4396_v62 = vcombine.low %v364_v48, %v368_v49  ;;  %v419_v44 = vld [vmem:[#allocation5 + $0x950] sm:$0xff] }
 0x18f   :  { %v4405_v0 = vcombine.high %v372_v57, %v376_v59  ;;  %v423_v46 = vld [vmem:[#allocation5 + $0x970] sm:$0xff]  ;;  %v420_v48 = vld [vmem:[#allocation5 + $0x958] sm:$0xff] }
 0x190   :  { %v424_v49 = vld [vmem:[#allocation5 + $0x978] sm:$0xff] }
 0x191   :  { %2998 = vmatpush1.bf16.msra.mxu0 %v4346_v4  ;;  %3202 = vmatpush1.bf16.msra.mxu1 %v4348_v6  ;;  %v380_v4 = vld [vmem:[#allocation5 + $0x818] sm:$0xff] }
 0x192   :  { %2999 = vmatprep.subr.bf16.mxu0 %v4355_v7  ;;  %3203 = vmatprep.subr.bf16.mxu1 %v4357_v8  ;;  %v384_v6 = vld [vmem:[#allocation5 + $0x838] sm:$0xff]  ;;  %v4402_v7 = vcombine.low %v371_v54, %v375_v55  ;;  %v4404_v8 = vcombine.low %v372_v57, %v376_v59  ;;  %v431_v54 = vld [vmem:[#allocation5 + $0x9b0] sm:$0xff]  ;;  %v4450_v59 = vcombine.low %v419_v44, %v423_v46 }
 0x193   :  { %v4413_v58 = vcombine.high %v380_v4, %v384_v6  ;;  %v428_v55 = vld [vmem:[#allocation5 + $0x998] sm:$0xff] }
 0x194   :  { %v432_v57 = vld [vmem:[#allocation5 + $0x9b8] sm:$0xff] }
 0x195   :  { %3000 = vmatpush1.bf16.msra.mxu0 %v4354_v13  ;;  %3204 = vmatpush1.bf16.msra.mxu1 %v4356_v15  ;;  %v388_v13 = vld [vmem:[#allocation5 + $0x858] sm:$0xff] }
 0x196   :  { %3001 = vmatprep.subr.bf16.mxu0 %v4363_v17  ;;  %3205 = vmatprep.subr.bf16.mxu1 %v4365_v18  ;;  %v392_v15 = vld [vmem:[#allocation5 + $0x878] sm:$0xff]  ;;  %v4410_v17 = vcombine.low %v379_v1, %v383_v3  ;;  %v4412_v18 = vcombine.low %v380_v4, %v384_v6  ;;  %v4460_v6 = vcombine.low %v428_v55, %v432_v57 }
 0x197   :  { %v4421_v20 = vcombine.high %v388_v13, %v392_v15  ;;  %v436_v1 = vld [vmem:[#allocation5 + $0x9d8] sm:$0xff] }
 0x198   :  { %v440_v3 = vld [vmem:[#allocation5 + $0x9f8] sm:$0xff] }
 0x199   :  { %3002 = vmatpush1.bf16.msra.mxu0 %v4362_v22  ;;  %3206 = vmatpush1.bf16.msra.mxu1 %v4364_v23  ;;  %v396_v22 = vld [vmem:[#allocation5 + $0x898] sm:$0xff] }
 0x19a   :  { %3003 = vmatprep.subr.bf16.mxu0 %v4371_v25  ;;  %3207 = vmatprep.subr.bf16.mxu1 %v4373_v26  ;;  %v400_v23 = vld [vmem:[#allocation5 + $0x8b8] sm:$0xff]  ;;  %v4418_v25 = vcombine.low %v387_v12, %v391_v14  ;;  %v4420_v26 = vcombine.low %v388_v13, %v392_v15  ;;  %v4468_v15 = vcombine.low %v436_v1, %v440_v3 }
 0x19b   :  { %v4429_v28 = vcombine.high %v396_v22, %v400_v23  ;;  %v444_v12 = vld [vmem:[#allocation5 + $0xa18] sm:$0xff] }
 0x19c   :  { %v448_v14 = vld [vmem:[#allocation5 + $0xa38] sm:$0xff] }
 0x19d   :  { %3004 = vmatpush1.bf16.msra.mxu0 %v4370_v37  ;;  %3208 = vmatpush1.bf16.msra.mxu1 %v4372_v31  ;;  %v404_v37 = vld [vmem:[#allocation5 + $0x8d8] sm:$0xff] }
 0x19e   :  { %3005 = vmatprep.subr.bf16.mxu0 %v4379_v32  ;;  %3209 = vmatprep.subr.bf16.mxu1 %v4381_v33  ;;  %v408_v31 = vld [vmem:[#allocation5 + $0x8f8] sm:$0xff]  ;;  %v4426_v32 = vcombine.low %v395_v21, %v399_v24  ;;  %v4435_v33 = vcombine.high %v403_v29, %v407_v30 }
 0x19f   :  { %v4437_v34 = vcombine.high %v404_v37, %v408_v31  ;;  %v452_v21 = vld [vmem:[#allocation5 + $0xa58] sm:$0xff] }
 0x1a0   :  { %v456_v24 = vld [vmem:[#allocation5 + $0xa78] sm:$0xff] }
 0x1a1   :  { %3006 = vmatpush1.bf16.msra.mxu0 %v4378_v41  ;;  %3210 = vmatpush1.bf16.msra.mxu1 %v4380_v47  ;;  %v416_v41 = vld [vmem:[#allocation5 + $0x938] sm:$0xff]  ;;  %v4434_v47 = vcombine.low %v403_v29, %v407_v30 }
 0x1a2   :  { %3007 = vmatprep.subr.bf16.mxu0 %v4387_v42  ;;  %3211 = vmatprep.subr.bf16.mxu1 %v4389_v43  ;;  %v4443_v42 = vcombine.high %v411_v38, %v415_v39  ;;  %v4445_v43 = vcombine.high %v412_v40, %v416_v41  ;;  %v460_v29 = vld [vmem:[#allocation5 + $0xa98] sm:$0xff] }
 0x1a3   :  { %v464_v30 = vld [vmem:[#allocation5 + $0xab8] sm:$0xff] }
 0x1a5   :  { %3008 = vmatpush1.bf16.msra.mxu0 %v4386_v50  ;;  %3212 = vmatpush1.bf16.msra.mxu1 %v4388_v51  ;;  %v4442_v50 = vcombine.low %v411_v38, %v415_v39  ;;  %v4444_v51 = vcombine.low %v412_v40, %v416_v41  ;;  %v468_v38 = vld [vmem:[#allocation5 + $0xad8] sm:$0xff]  ;;  %v4492_v41 = vcombine.low %v460_v29, %v464_v30 }
 0x1a6   :  { %3009 = vmatprep.subr.bf16.mxu0 %v4395_v52  ;;  %3213 = vmatprep.subr.bf16.mxu1 %v4397_v53  ;;  %v4453_v52 = vcombine.high %v420_v48, %v424_v49  ;;  %v427_v53 = vld [vmem:[#allocation5 + $0x990] sm:$0xff]  ;;  %v472_v39 = vld [vmem:[#allocation5 + $0xaf8] sm:$0xff] }
 0x1a7   :  { %v4458_v4 = vcombine.low %v427_v53, %v431_v54 }
 0x1a9   :  { %3010 = vmatpush1.bf16.msra.mxu0 %v4394_v60  ;;  %3214 = vmatpush1.bf16.msra.mxu1 %v4396_v62  ;;  %v4452_v60 = vcombine.low %v420_v48, %v424_v49  ;;  %v4459_v62 = vcombine.high %v427_v53, %v431_v54  ;;  %v4500_v49 = vcombine.low %v468_v38, %v472_v39  ;;  %v484_v53 = vld [vmem:[#allocation5 + $0xb58] sm:$0xff] }
 0x1aa   :  { %3011 = vmatprep.subr.bf16.mxu0 %v4403_v63  ;;  %3215 = vmatprep.subr.bf16.mxu1 %v4405_v0  ;;  %v435_v63 = vld [vmem:[#allocation5 + $0x9d0] sm:$0xff]  ;;  %v488_v54 = vld [vmem:[#allocation5 + $0xb78] sm:$0xff] }
 0x1ab   :  { %v439_v0 = vld [vmem:[#allocation5 + $0x9f0] sm:$0xff] }
 0x1ac   :  { %v4466_v13 = vcombine.low %v435_v63, %v439_v0 }
 0x1ad   :  { %3012 = vmatpush1.bf16.msra.mxu0 %v4402_v7  ;;  %3216 = vmatpush1.bf16.msra.mxu1 %v4404_v8  ;;  %v4467_v7 = vcombine.high %v435_v63, %v439_v0  ;;  %v4469_v8 = vcombine.high %v436_v1, %v440_v3  ;;  %v492_v63 = vld [vmem:[#allocation5 + $0xb98] sm:$0xff]  ;;  %v4516_v3 = vcombine.low %v484_v53, %v488_v54 }
 0x1ae   :  { %3032 = vmatprep.subr.bf16.mxu0 %v4411_v11  ;;  %3236 = vmatprep.subr.bf16.mxu1 %v4413_v58  ;;  %v443_v11 = vld [vmem:[#allocation5 + $0xa10] sm:$0xff]  ;;  %v496_v0 = vld [vmem:[#allocation5 + $0xbb8] sm:$0xff] }
 0x1af   :  { %v447_v58 = vld [vmem:[#allocation5 + $0xa30] sm:$0xff] }
 0x1b0   :  { %3014 = vmatmul.mubr.bf16.vlgmr.msra.gmra.mrb[8].mxu0 %v5251_v35  ;;  %3218 = vmatmul.mubr.bf16.vlgmr.msra.gmra.mrb[8].mxu1 %v5251_v35  ;;  %v4428_v35 = vcombine.low %v396_v22, %v400_v23  ;;  %v4474_v22 = vcombine.low %v443_v11, %v447_v58  ;;  %v4476_v23 = vcombine.low %v444_v12, %v448_v14 }
 0x1b1   :  { %3033 = vmatpush1.bf16.msra.mxu0 %v4410_v17  ;;  %3237 = vmatpush1.bf16.msra.mxu1 %v4412_v18  ;;  %v4475_v17 = vcombine.high %v443_v11, %v447_v58  ;;  %v4477_v18 = vcombine.high %v444_v12, %v448_v14  ;;  %v500_v11 = vld [vmem:[#allocation5 + $0xbd8] sm:$0xff]  ;;  %v4524_v14 = vcombine.low %v492_v63, %v496_v0 }
 0x1b2   :  { %3034 = vmatprep.subr.bf16.mxu0 %v4419_v19  ;;  %3238 = vmatprep.subr.bf16.mxu1 %v4421_v20  ;;  %v451_v19 = vld [vmem:[#allocation5 + $0xa50] sm:$0xff]  ;;  %v504_v58 = vld [vmem:[#allocation5 + $0xbf8] sm:$0xff] }
 0x1b3   :  { %3023 = vmatprep.mubr.bf16.mxu0 %v5253_v45  ;;  %3227 = vmatprep.mubr.bf16.mxu1 %v5253_v45  ;;  %v4436_v45 = vcombine.low %v404_v37, %v408_v31  ;;  %v455_v20 = vld [vmem:[#allocation5 + $0xa70] sm:$0xff]  ;;  %v4484_v31 = vcombine.low %v452_v21, %v456_v24 }
 0x1b4   :  { %v4482_v37 = vcombine.low %v451_v19, %v455_v20 }
 0x1b5   :  { %3035 = vmatpush1.bf16.msra.mxu0 %v4418_v25  ;;  %3239 = vmatpush1.bf16.msra.mxu1 %v4420_v26  ;;  %v4483_v25 = vcombine.high %v451_v19, %v455_v20  ;;  %v4485_v26 = vcombine.high %v452_v21, %v456_v24  ;;  %v508_v19 = vld [vmem:[#allocation5 + $0xc18] sm:$0xff]  ;;  %v4532_v24 = vcombine.low %v500_v11, %v504_v58 }
 0x1b6   :  { %3036 = vmatprep.subr.bf16.mxu0 %v4427_v27  ;;  %3240 = vmatprep.subr.bf16.mxu1 %v4429_v28  ;;  %v459_v27 = vld [vmem:[#allocation5 + $0xa90] sm:$0xff]  ;;  %v512_v20 = vld [vmem:[#allocation5 + $0xc38] sm:$0xff] }
 0x1b7   :  { %v463_v28 = vld [vmem:[#allocation5 + $0xab0] sm:$0xff] }
 0x1b8   :  { %3024 = vmatmul.mubr.bf16.gmra.mrb[12].mxu0 %v5259_v56  ;;  %3228 = vmatmul.mubr.bf16.gmra.mrb[12].mxu1 %v5259_v56  ;;  %v4451_v56 = vcombine.high %v419_v44, %v423_v46  ;;  %v4490_v40 = vcombine.low %v459_v27, %v463_v28  ;;  %v476_v44 = vld [vmem:[#allocation5 + $0xb18] sm:$0xff] }
 0x1b9   :  { %3037 = vmatpush1.bf16.msra.mxu0 %v4426_v32  ;;  %3241 = vmatpush1.bf16.msra.mxu1 %v4428_v35  ;;  %v4491_v32 = vcombine.high %v459_v27, %v463_v28  ;;  %v4493_v35 = vcombine.high %v460_v29, %v464_v30  ;;  %v480_v46 = vld [vmem:[#allocation5 + $0xb38] sm:$0xff]  ;;  %v4862_v27 = vld [vmem:[#allocation8 + $0x40] sm:$0xff]   ;;  %v515_v29 = vlaneseq }
 0x1ba   :  { %3038 = vmatprep.subr.bf16.mxu0 %v4435_v33  ;;  %3242 = vmatprep.subr.bf16.mxu1 %v4437_v34  ;;  %v467_v33 = vld [vmem:[#allocation5 + $0xad0] sm:$0xff]  ;;  %v4863_v28 = vld [vmem:[#allocation8 + $0xc0] sm:$0xff]  }
 0x1bb   :  { %3064 = vmatprep.mubr.bf16.mxu0 %v5261_v2  ;;  %3268 = vmatprep.mubr.bf16.mxu1 %v5261_v2  ;;  %v4461_v2 = vcombine.high %v428_v55, %v432_v57  ;;  %v471_v34 = vld [vmem:[#allocation5 + $0xaf0] sm:$0xff]  ;;  %v4508_v57 = vcombine.low %v476_v44, %v480_v46  ;;  %v5319_v30 = vshrl.u32 %v515_v29, 7 }
 0x1bc   :  { %v4498_v48 = vcombine.low %v467_v33, %v471_v34 }
 0x1bd   :  { %3039 = vmatpush1.bf16.msra.mxu0 %v4434_v47  ;;  %3243 = vmatpush1.bf16.msra.mxu1 %v4436_v45  ;;  %v4499_v47 = vcombine.high %v467_v33, %v471_v34  ;;  %v4501_v45 = vcombine.high %v468_v38, %v472_v39  ;;  %v4866_v33 = vld [vmem:[#allocation8 + $0x48] sm:$0xff]   ;;  %v529_v34 = vsub.s32 3, %v5319_v30 }
 0x1be   :  { %3040 = vmatprep.subr.bf16.mxu0 %v4443_v42  ;;  %3244 = vmatprep.subr.bf16.mxu1 %v4445_v43  ;;  %v475_v42 = vld [vmem:[#allocation5 + $0xb10] sm:$0xff] }
 0x1bf   :  { %v479_v43 = vld [vmem:[#allocation5 + $0xb30] sm:$0xff] }
 0x1c0   :  { %v4506_v55 = vcombine.low %v475_v42, %v479_v43  ;;  %v4867_v38 = vld [vmem:[#allocation8 + $0xc8] sm:$0xff]  }
 0x1c1   :  { %3041 = vmatpush1.bf16.msra.mxu0 %v4442_v50  ;;  %3245 = vmatpush1.bf16.msra.mxu1 %v4444_v51  ;;  %v4507_v50 = vcombine.high %v475_v42, %v479_v43  ;;  %v4509_v51 = vcombine.high %v476_v44, %v480_v46  ;;  %v4870_v42 = vld [vmem:[#allocation8 + $0x50] sm:$0xff]  }
 0x1c2   :  { %3042 = vmatprep.subr.bf16.mxu0 %v4451_v56  ;;  %3246 = vmatprep.subr.bf16.mxu1 %v4453_v52  ;;  %v483_v56 = vld [vmem:[#allocation5 + $0xb50] sm:$0xff]  ;;  %v4871_v44 = vld [vmem:[#allocation8 + $0xd0] sm:$0xff]  }
 0x1c3   :  { %v487_v52 = vld [vmem:[#allocation5 + $0xb70] sm:$0xff] }
 0x1c4   :  { %v4514_v1 = vcombine.low %v483_v56, %v487_v52 }
 0x1c5   :  { %3043 = vmatpush1.bf16.msra.mxu0 %v4450_v59  ;;  %3247 = vmatpush1.bf16.msra.mxu1 %v4452_v60  ;;  %v4515_v59 = vcombine.high %v483_v56, %v487_v52  ;;  %v4517_v60 = vcombine.high %v484_v53, %v488_v54  ;;  %v4872_v52 = vld [vmem:[#allocation8 + $0x10] sm:$0xff]  }
 0x1c6   :  { %3044 = vmatprep.subr.bf16.mxu0 %v4459_v62  ;;  %3248 = vmatprep.subr.bf16.mxu1 %v4461_v2  ;;  %v491_v62 = vld [vmem:[#allocation5 + $0xb90] sm:$0xff] }
 0x1c7   :  { %v495_v2 = vld [vmem:[#allocation5 + $0xbb0] sm:$0xff] }
 0x1c8   :  { %v4522_v12 = vcombine.low %v491_v62, %v495_v2 }
 0x1c9   :  { %3045 = vmatpush1.bf16.msra.mxu0 %v4458_v4  ;;  %3249 = vmatpush1.bf16.msra.mxu1 %v4460_v6  ;;  %v4523_v4 = vcombine.high %v491_v62, %v495_v2  ;;  %v4525_v6 = vcombine.high %v492_v63, %v496_v0  ;;  %v4875_v2 = vld [vmem:[#allocation8 + $0xd8] sm:$0xff]  }
 0x1ca   :  { %3046 = vmatprep.subr.bf16.mxu0 %v4467_v7  ;;  %3250 = vmatprep.subr.bf16.mxu1 %v4469_v8  ;;  %v499_v7 = vld [vmem:[#allocation5 + $0xbd0] sm:$0xff] }
 0x1cb   :  { %v503_v8 = vld [vmem:[#allocation5 + $0xbf0] sm:$0xff] }
 0x1cc   :  { %v4530_v21 = vcombine.low %v499_v7, %v503_v8 }
 0x1cd   :  { %3047 = vmatpush1.bf16.msra.mxu0 %v4466_v13  ;;  %3251 = vmatpush1.bf16.msra.mxu1 %v4468_v15  ;;  %v4531_v13 = vcombine.high %v499_v7, %v503_v8  ;;  %v4533_v15 = vcombine.high %v500_v11, %v504_v58  ;;  %v4879_v7 = vld [vmem:[#allocation8 + $0xe0] sm:$0xff]  }
 0x1ce   :  { %3048 = vmatprep.subr.bf16.mxu0 %v4475_v17  ;;  %3252 = vmatprep.subr.bf16.mxu1 %v4477_v18  ;;  %v507_v17 = vld [vmem:[#allocation5 + $0xc10] sm:$0xff] }
 0x1cf   :  { %v511_v18 = vld [vmem:[#allocation5 + $0xc30] sm:$0xff] }
 0x1d1   :  { %3049 = vmatpush1.bf16.msra.mxu0 %v4474_v22  ;;  %3253 = vmatpush1.bf16.msra.mxu1 %v4476_v23  ;;  %v4539_v22 = vcombine.high %v507_v17, %v511_v18  ;;  %v4541_v23 = vcombine.high %v508_v19, %v512_v20 }
 0x1d2   :  { %3050 = vmatprep.subr.bf16.mxu0 %v4483_v25  ;;  %3254 = vmatprep.subr.bf16.mxu1 %v4485_v26  ;;  %v4538_v25 = vcombine.low %v507_v17, %v511_v18  ;;  %v4540_v26 = vcombine.low %v508_v19, %v512_v20  ;;  %v4881_v17 = vld [vmem:[#allocation8 + $0xa0] sm:$0xff]   ;;  %v4882_v18 = vld [vmem:[#allocation8 + $0x68] sm:$0xff]  }
 0x1d5   :  { %3051 = vmatpush1.bf16.msra.mxu0 %v4482_v37  ;;  %3255 = vmatpush1.bf16.msra.mxu1 %v4484_v31  ;;  %v4864_v37 = vld [vmem:[#allocation8] sm:$0xff]   ;;  %v5325_v31 = vld [vmem:[#allocation7] sm:$0xff] }
 0x1d6   :  { %3052 = vmatprep.subr.bf16.mxu0 %v4491_v32  ;;  %3256 = vmatprep.subr.bf16.mxu1 %v4493_v35  ;;  %v521_v32 = vsub.s32 1, %v5319_v30  ;;  %v4865_v35 = vld [vmem:[#allocation8 + $0x80] sm:$0xff]  }
 0x1d9   :  { %3053 = vmatpush1.bf16.msra.mxu0 %v4490_v40  ;;  %3257 = vmatpush1.bf16.msra.mxu1 %v4492_v41  ;;  %v4868_v40 = vld [vmem:[#allocation8 + $0x8] sm:$0xff]   ;;  %v522_v41 = vrot.slane %v5325_v31, %v521_v32 }
 0x1da   :  { %3054 = vmatprep.subr.bf16.mxu0 %v4499_v47  ;;  %3258 = vmatprep.subr.bf16.mxu1 %v4501_v45  ;;  %v4869_v47 = vld [vmem:[#allocation8 + $0x88] sm:$0xff]   ;;  %v530_v45 = vrot.slane %v5325_v31, %v529_v34 }
 0x1dd   :  { %3055 = vmatpush1.bf16.msra.mxu0 %v4498_v48  ;;  %3259 = vmatpush1.bf16.msra.mxu1 %v4500_v49 }
 0x1de   :  { %3056 = vmatprep.subr.bf16.mxu0 %v4507_v50  ;;  %3260 = vmatprep.subr.bf16.mxu1 %v4509_v51 }
 0x1e1   :  { %3057 = vmatpush1.bf16.msra.mxu0 %v4506_v55  ;;  %3261 = vmatpush1.bf16.msra.mxu1 %v4508_v57 }
 0x1e2   :  { %3058 = vmatprep.subr.bf16.mxu0 %v4515_v59  ;;  %3262 = vmatprep.subr.bf16.mxu1 %v4517_v60  ;;  %v4873_v59 = vld [vmem:[#allocation8 + $0x90] sm:$0xff]   ;;  %v4874_v60 = vld [vmem:[#allocation8 + $0x58] sm:$0xff]  }
 0x1e5   :  { %3059 = vmatpush1.bf16.msra.mxu0 %v4514_v1  ;;  %3263 = vmatpush1.bf16.msra.mxu1 %v4516_v3  ;;  %v4876_v1 = vld [vmem:[#allocation8 + $0x18] sm:$0xff]  }
 0x1e6   :  { %3060 = vmatprep.subr.bf16.mxu0 %v4523_v4  ;;  %3264 = vmatprep.subr.bf16.mxu1 %v4525_v6  ;;  %v4877_v3 = vld [vmem:[#allocation8 + $0x98] sm:$0xff]   ;;  %v4878_v4 = vld [vmem:[#allocation8 + $0x60] sm:$0xff]  }
 0x1e9   :  { %3061 = vmatpush1.bf16.msra.mxu0 %v4522_v12  ;;  %3265 = vmatpush1.bf16.msra.mxu1 %v4524_v14  ;;  %v4880_v14 = vld [vmem:[#allocation8 + $0x20] sm:$0xff]  }
 0x1ea   :  { %3062 = vmatprep.subr.bf16.mxu0 %v4531_v13  ;;  %3266 = vmatprep.subr.bf16.mxu1 %v4533_v15 }
 0x1ed   :  { %3063 = vmatpush1.bf16.msra.mxu0 %v4530_v21  ;;  %3267 = vmatpush1.bf16.msra.mxu1 %v4532_v24  ;;  %v4883_v21 = vld [vmem:[#allocation8 + $0xe8] sm:$0xff]  }
 0x1ee   :  { %3083 = vmatprep.subr.bf16.mxu0 %v4539_v22  ;;  %3287 = vmatprep.subr.bf16.mxu1 %v4541_v23  ;;  %v4884_v23 = vld [vmem:[#allocation8 + $0x28] sm:$0xff]  }
 0x1f0   :  { %3065 = vmatmul.mubr.bf16.vlgmr.msra.gmra.mrb[8].mxu0 %v5267_v61  ;;  %3269 = vmatmul.mubr.bf16.vlgmr.msra.gmra.mrb[8].mxu1 %v5267_v61  ;;  %v517_v61 = vsub.s32 0, %v5319_v30 }
 0x1f1   :  { %3084 = vmatpush1.bf16.msra.mxu0 %v4538_v25  ;;  %3288 = vmatpush1.bf16.msra.mxu1 %v4540_v26  ;;  %v4885_v26 = vld [vmem:[#allocation8 + $0xa8] sm:$0xff]  }
 0x1f2   :  { %3074 = vmatprep.mubr.bf16.mxu0 %v5269_v5  ;;  %3278 = vmatprep.mubr.bf16.mxu1 %v5269_v5  ;;  %v525_v5 = vsub.s32 2, %v5319_v30 }
 0x1f3   :  { %4615 = vmatprep.subr.bf16.mxu0 %v4862_v27  ;;  %4643 = vmatprep.subr.bf16.mxu1 %v4863_v28  ;;  %v4886_v27 = vld [vmem:[#allocation8 + $0x70] sm:$0xff]  }
 0x1f4   :  { %v5338_v39 = vrot.slane %v5325_v31, %v525_v5 }
 0x1f8   :  { %3075 = vmatmul.mubr.bf16.gmra.mrb[12].mxu0 %v5275_v9  ;;  %3279 = vmatmul.mubr.bf16.gmra.mrb[12].mxu1 %v5275_v9  ;;  %v5333_v9 = vrot.slane %v5325_v31, %v517_v61  ;;  %v4887_v61 = vld [vmem:[#allocation8 + $0xf0] sm:$0xff]  }
 0x1f9   :  { %3115 = vmatprep.mubr.bf16.mxu0 %v5137_v10  ;;  %3319 = vmatprep.mubr.bf16.mxu1 %v5137_v10 }
 0x200   :  { %4546 = vmatmul.mubr.msk.bf16.vlgmr.msra.gmra.mrb[8].mxu0 %vm2515_vm0, %v5281_v16  ;;  %4548 = vmatmul.mubr.msk.bf16.vlgmr.msra.gmra.mrb[8].mxu1 %vm2515_vm0, %v5281_v16 }
 0x201   :  { %4616 = vmatpush3.bf16.msra.mxu0 %v4864_v37  ;;  %4644 = vmatpush3.bf16.msra.mxu1 %v4865_v35  ;;  %v4888_v35 = vld [vmem:[#allocation8 + $0x30] sm:$0xff]  }
 0x202   :  { %4617 = vmatprep.subr.bf16.mxu0 %v4866_v33  ;;  %4645 = vmatprep.subr.bf16.mxu1 %v4867_v38 }
 0x203   :  { %v2709_v43 = vpop.f32.mrb[0].mxu0  ;;  %3125 = vmatprep.mubr.bf16.mxu0 %v5137_v10  ;;  %v2913_v46 = vpop.f32.mrb[0].mxu1  ;;  %3329 = vmatprep.mubr.bf16.mxu1 %v5137_v10 }
 0x204   :  { %v4727_v16 = vadd.f32 %v2709_v43, %v5333_v9  ;;  %v2711_v48 = vpop.f32.mrb[1].mxu0  ;;  %v4733_v49 = vadd.f32 %v2913_v46, %v5338_v39  ;;  %v2915_v51 = vpop.f32.mrb[1].mxu1  ;;  %v4891_v43 = vld [vmem:[#allocation8 + $0xf8] sm:$0xff]   ;;  %v4894_v46 = vld [vmem:[#allocation8 + $0x140] sm:$0xff]  }
 0x205   :  { %4618 = vmatpush3.bf16.msra.mxu0 %v4868_v40  ;;  %v4728_v50 = vadd.f32 %v2711_v48, %v522_v41  ;;  %v2713_v56 = vpop.f32.mrb[2].mxu0  ;;  %4646 = vmatpush3.bf16.msra.mxu1 %v4869_v47  ;;  %v4734_v53 = vadd.f32 %v2915_v51, %v530_v45  ;;  %v2917_v55 = vpop.f32.mrb[2].mxu1  ;;  %v4889_v40 = vld [vmem:[#allocation8 + $0xb0] sm:$0xff]  }
 0x206   :  { %4926 = vtanh.f32 %v4727_v16  ;;  %v4729_v54 = vadd.f32 %v2713_v56, %v5333_v9  ;;  %v2715_v57 = vpop.f32.mrb[3].mxu0  ;;  %4619 = vmatprep.subr.bf16.mxu0 %v4870_v42  ;;  %v4735_v10 = vadd.f32 %v2917_v55, %v5338_v39  ;;  %v2919_v62 = vpop.f32.mrb[3].mxu1  ;;  %4647 = vmatprep.subr.bf16.mxu1 %v4871_v44  ;;  %v4890_v42 = vld [vmem:[#allocation8 + $0x78] sm:$0xff]   ;;  %v4897_v56 = vld [vmem:[#allocation8 + $0x180] sm:$0xff]   ;;  %v4900_v55 = vld [vmem:[#allocation8 + $0x108] sm:$0xff]  }
 0x207   :  { %4928 = vtanh.f32 %v4733_v49  ;;  %v4730_v63 = vadd.f32 %v2715_v57, %v522_v41  ;;  %v4736_v0 = vadd.f32 %v2919_v62, %v530_v45  ;;  %v4893_v16 = vld [vmem:[#allocation8 + $0xb8] sm:$0xff]   ;;  %v4903_v62 = vld [vmem:[#allocation8 + $0x1d0] sm:$0xff]  }
 0x208   :  { %4930 = vtanh.f32 %v4728_v50  ;;  %4547 = vmatmul.mubr.msk.bf16.gmra.mrb[12].mxu0 %vm2515_vm0, %v5289_v36  ;;  %4549 = vmatmul.mubr.msk.bf16.gmra.mrb[12].mxu1 %vm2515_vm0, %v5289_v36  ;;  %v4896_v50 = vld [vmem:[#allocation8 + $0x100] sm:$0xff]  }
 0x209   :  { %4932 = vtanh.f32 %v4734_v53  ;;  %4620 = vmatpush3.bf16.msra.mxu0 %v4872_v52  ;;  %4648 = vmatpush3.bf16.msra.mxu1 %v4873_v59  ;;  %v4898_v52 = vld [vmem:[#allocation8 + $0x148] sm:$0xff]  }
 0x20a   :  { %4934 = vtanh.f32 %v4729_v54  ;;  %4621 = vmatprep.subr.bf16.mxu0 %v4874_v60  ;;  %4649 = vmatprep.subr.bf16.mxu1 %v4875_v2  ;;  %v4899_v54 = vld [vmem:[#allocation8 + $0x1c8] sm:$0xff]   ;;  %v4902_v60 = vld [vmem:[#allocation8 + $0x150] sm:$0xff]  }
 0x20b   :  { %4936 = vtanh.f32 %v4735_v10  ;;  %v2719_v6 = vpop.f32.mrb[4].mxu0  ;;  %v2923_v8 = vpop.f32.mrb[4].mxu1  ;;  %v4901_v59 = vld [vmem:[#allocation8 + $0x188] sm:$0xff]  }
 0x20c   :  { %4938 = vtanh.f32 %v4730_v63  ;;  %v2721_v11 = vpop.f32.mrb[5].mxu0  ;;  %v2925_v58 = vpop.f32.mrb[5].mxu1  ;;  %v4731_v32 = vadd.f32 %v2719_v6, %v5333_v9  ;;  %v4737_v38 = vadd.f32 %v2923_v8, %v5338_v39  ;;  %v4892_v9 = vld [vmem:[#allocation8 + $0x38] sm:$0xff]   ;;  %v4895_v39 = vld [vmem:[#allocation8 + $0x1c0] sm:$0xff]   ;;  %v4904_v63 = vld [vmem:[#allocation8 + $0x110] sm:$0xff]  }
 0x20d   :  { %4940 = vtanh.f32 %v4736_v0  ;;  %4622 = vmatpush3.bf16.msra.mxu0 %v4876_v1  ;;  %v2723_v12 = vpop.f32.mrb[6].mxu0  ;;  %4650 = vmatpush3.bf16.msra.mxu1 %v4877_v3  ;;  %v4732_v36 = vadd.f32 %v2721_v11, %v522_v41  ;;  %v2927_v13 = vpop.f32.mrb[6].mxu1  ;;  %v4738_v19 = vadd.f32 %v2925_v58, %v530_v45  ;;  %v4905_v1 = vld [vmem:[#allocation8 + $0x190] sm:$0xff]   ;;  %v4906_v3 = vld [vmem:[#allocation8 + $0x158] sm:$0xff]   ;;  %v4910_v8 = vld [vmem:[#allocation8 + $0x160] sm:$0xff]  }
 0x20e   :  { %v2724_v15 = vpop.f32.mrb[7].mxu0  ;;  %4623 = vmatprep.subr.bf16.mxu0 %v4878_v4  ;;  %v2928_v20 = vpop.f32.mrb[7].mxu1  ;;  %4651 = vmatprep.subr.bf16.mxu1 %v4879_v7  ;;  %v4907_v4 = vld [vmem:[#allocation8 + $0x1d8] sm:$0xff]   ;;  %v4911_v11 = vld [vmem:[#allocation8 + $0x1e0] sm:$0xff]   ;;  %v4916_v13 = vld [vmem:[#allocation8 + $0x128] sm:$0xff]  }
 0x20f   :  { %4942 = vtanh.f32 %v4732_v36  ;;  %v4908_v6 = vld [vmem:[#allocation8 + $0x118] sm:$0xff]   ;;  %v4912_v58 = vld [vmem:[#allocation8 + $0x120] sm:$0xff]   ;;  %v4915_v36 = vld [vmem:[#allocation8 + $0x1e8] sm:$0xff]  }
 0x210   :  { %v4927_v24 = vpop.eup %4926  ;;  %4944 = vtanh.f32 %v4738_v19  ;;  %v4909_v7 = vld [vmem:[#allocation8 + $0x198] sm:$0xff]   ;;  %v4913_v12 = vld [vmem:[#allocation8 + $0x1a0] sm:$0xff]   ;;  %v4917_v15 = vld [vmem:[#allocation8 + $0x1a8] sm:$0xff]  }
 0x211   :  { %v4929_v22 = vpop.eup %4928  ;;  %4624 = vmatpush3.bf16.msra.mxu0 %v4880_v14  ;;  %4652 = vmatpush3.bf16.msra.mxu1 %v4881_v17  ;;  %4946 = vtanh.f32 %v4731_v32  ;;  %v4914_v14 = vld [vmem:[#allocation8 + $0x168] sm:$0xff]   ;;  %v4918_v17 = vld [vmem:[#allocation8 + $0x170] sm:$0xff]  }
 0x212   :  { %v4931_v25 = vpop.eup %4930  ;;  %4625 = vmatprep.subr.bf16.mxu0 %v4882_v18  ;;  %4653 = vmatprep.subr.bf16.mxu1 %v4883_v21  ;;  %4948 = vtanh.f32 %v4737_v38  ;;  %v4919_v18 = vld [vmem:[#allocation8 + $0x1f0] sm:$0xff]   ;;  %v4922_v21 = vld [vmem:[#allocation8 + $0x178] sm:$0xff]  }
 0x213   :  { %v4933_v28 = vpop.eup %4932  ;;  %v4920_v19 = vld [vmem:[#allocation8 + $0x130] sm:$0xff]  }
 0x214   :  { %v4935_v37 = vpop.eup %4934  ;;  %v4921_v20 = vld [vmem:[#allocation8 + $0x1b0] sm:$0xff]  }
 0x215   :  { %v4937_v5 = vpop.eup %4936  ;;  %4626 = vmatpush3.bf16.msra.mxu0 %v4884_v23  ;;  %v3362_v33 = vpack.c.bf16 %v4935_v37, %v4927_v24  ;;  %4654 = vmatpush3.bf16.msra.mxu1 %v4885_v26  ;;  %v4923_v24 = vld [vmem:[#allocation8 + $0x1f8] sm:$0xff]   ;;  %v541_v26 = vsub.s32 6, %v5319_v30 }
 0x216   :  { %v4939_v34 = vpop.eup %4938  ;;  %4627 = vmatprep.subr.bf16.mxu0 %v4886_v27  ;;  %v3364_v41 = vpack.c.bf16 %v4937_v5, %v4929_v22  ;;  %4655 = vmatprep.subr.bf16.mxu1 %v4887_v61  ;;  %v4924_v22 = vld [vmem:[#allocation8 + $0x138] sm:$0xff]   ;;  %v537_v27 = vsub.s32 5, %v5319_v30 }
 0x217   :  { %v4941_v47 = vpop.eup %4940  ;;  %v3363_v45 = vpack.c.bf16 %v4939_v34, %v4931_v25  ;;  %v4925_v23 = vld [vmem:[#allocation8 + $0x1b8] sm:$0xff]   ;;  %v533_v25 = vsub.s32 4, %v5319_v30  ;;  %v542_v37 = vrot.slane %v5325_v31, %v541_v26 }
 0x218   :  { %v3365_v44 = vpack.c.bf16 %v4941_v47, %v4933_v28  ;;  %v545_v28 = vsub.s32 7, %v5319_v30  ;;  %v538_v5 = vrot.slane %v5325_v31, %v537_v27 }
 0x219   :  { %3929 = vmatprep.mubr.bf16.mxu0 %v3363_v45  ;;  %4628 = vmatpush3.bf16.msra.mxu0 %v4888_v35  ;;  %v4943_v48 = vpop.eup %4942  ;;  %v534_v61 = vrot.slane %v5325_v31, %v533_v25 }
 0x21a   :  { %3977 = vmatprep.mubr.bf16.mxu1 %v3365_v44  ;;  %4656 = vmatpush3.bf16.msra.mxu1 %v4889_v40  ;;  %v4945_v49 = vpop.eup %4944  ;;  %v3371_v51 = vpack.c.bf16 %v4943_v48, %v4943_v48  ;;  %v546_v32 = vrot.slane %v5325_v31, %v545_v28 }
 0x21b   :  { %4629 = vmatprep.subr.bf16.mxu0 %v4890_v42  ;;  %4657 = vmatprep.subr.bf16.mxu1 %v4891_v43  ;;  %v3373_v53 = vpack.c.bf16 %v4945_v49, %v4945_v49  ;;  %v4947_v57 = vpop.eup %4946 }
 0x21c   :  { %v4949_v10 = vpop.eup %4948  ;;  %v3370_v2 = vpack.c.bf16 %v4947_v57, %v4947_v57 }
 0x21d   :  { %4630 = vmatpush3.bf16.msra.mxu0 %v4892_v9  ;;  %v3372_v0 = vpack.c.bf16 %v4949_v10, %v4949_v10 }
 0x21e   :  { %4658 = vmatpush3.bf16.msra.mxu1 %v4893_v16  ;;  %4671 = vmatprep.subr.bf16.mxu0 %v4894_v46 }
 0x21f   :  { %4699 = vmatprep.subr.bf16.mxu1 %v4895_v39 }
 0x220   :  { %3930 = vmatmul.mubr.bf16.vlgmr.msra.gmra.mrb[16].mxu0 %v3362_v33 }
 0x221   :  { %3978 = vmatmul.mubr.bf16.vlgmr.msra.gmra.mrb[16].mxu1 %v3364_v41  ;;  %3937 = vmatprep.mubr.bf16.mxu0 %v3371_v51 }
 0x222   :  { %3985 = vmatprep.mubr.bf16.mxu1 %v3373_v53  ;;  %4672 = vmatpush3.bf16.msra.mxu0 %v4896_v50 }
 0x223   :  { %4700 = vmatpush3.bf16.msra.mxu1 %v4897_v56  ;;  %4673 = vmatprep.subr.bf16.mxu0 %v4898_v52 }
 0x224   :  { %4701 = vmatprep.subr.bf16.mxu1 %v4899_v54 }
 0x226   :  { %4674 = vmatpush3.bf16.msra.mxu0 %v4900_v55 }
 0x227   :  { %4702 = vmatpush3.bf16.msra.mxu1 %v4901_v59  ;;  %4675 = vmatprep.subr.bf16.mxu0 %v4902_v60 }
 0x228   :  { %3938 = vmatmul.mubr.bf16.gmra.mrb[20].mxu0 %v3370_v2  ;;  %4703 = vmatprep.subr.bf16.mxu1 %v4903_v62 }
 0x229   :  { %3986 = vmatmul.mubr.bf16.gmra.mrb[20].mxu1 %v3372_v0 }
 0x22a   :  { %4676 = vmatpush3.bf16.msra.mxu0 %v4904_v63 }
 0x22b   :  { %4704 = vmatpush3.bf16.msra.mxu1 %v4905_v1  ;;  %4677 = vmatprep.subr.bf16.mxu0 %v4906_v3 }
 0x22c   :  { %4705 = vmatprep.subr.bf16.mxu1 %v4907_v4 }
 0x22e   :  { %4678 = vmatpush3.bf16.msra.mxu0 %v4908_v6 }
 0x22f   :  { %4706 = vmatpush3.bf16.msra.mxu1 %v4909_v7  ;;  %4679 = vmatprep.subr.bf16.mxu0 %v4910_v8 }
 0x230   :  { %4707 = vmatprep.subr.bf16.mxu1 %v4911_v11 }
 0x232   :  { %4680 = vmatpush3.bf16.msra.mxu0 %v4912_v58 }
 0x233   :  { %4708 = vmatpush3.bf16.msra.mxu1 %v4913_v12  ;;  %4681 = vmatprep.subr.bf16.mxu0 %v4914_v14 }
 0x234   :  { %4709 = vmatprep.subr.bf16.mxu1 %v4915_v36 }
 0x236   :  { %4682 = vmatpush3.bf16.msra.mxu0 %v4916_v13 }
 0x237   :  { %4710 = vmatpush3.bf16.msra.mxu1 %v4917_v15  ;;  %4683 = vmatprep.subr.bf16.mxu0 %v4918_v17 }
 0x238   :  { %4711 = vmatprep.subr.bf16.mxu1 %v4919_v18 }
 0x23a   :  { %4684 = vmatpush3.bf16.msra.mxu0 %v4920_v19 }
 0x23b   :  { %4712 = vmatpush3.bf16.msra.mxu1 %v4921_v20  ;;  %4685 = vmatprep.subr.bf16.mxu0 %v4922_v21  ;;  %v4550_v20 = vld [vmem:[#allocation10] ss:$0 sm:$0xff] }
 0x23c   :  { %4713 = vmatprep.subr.bf16.mxu1 %v4923_v24 }
 0x23e   :  { %4686 = vmatpush3.bf16.msra.mxu0 %v4924_v22 }
 0x23f   :  { %4714 = vmatpush3.bf16.msra.mxu1 %v4925_v23 }
 0x2d3   :  { %v3117_v35 = vpop.f32.mrb[8].mxu0  ;;  %v3321_v34 = vpop.f32.mrb[8].mxu1 }
 0x2d4   :  { %v4739_v33 = vadd.f32 %v3117_v35, %v534_v61  ;;  %v3119_v38 = vpop.f32.mrb[9].mxu0  ;;  %v4745_v40 = vadd.f32 %v3321_v34, %v542_v37  ;;  %v3323_v47 = vpop.f32.mrb[9].mxu1 }
 0x2d5   :  { %v4740_v41 = vadd.f32 %v3119_v38, %v538_v5  ;;  %v3121_v45 = vpop.f32.mrb[10].mxu0  ;;  %v4746_v42 = vadd.f32 %v3323_v47, %v546_v32  ;;  %v3325_v30 = vpop.f32.mrb[10].mxu1 }
 0x2d6   :  { %4950 = vtanh.f32 %v4739_v33  ;;  %v4741_v43 = vadd.f32 %v3121_v45, %v534_v61  ;;  %v3123_v44 = vpop.f32.mrb[11].mxu0  ;;  %v4747_v9 = vadd.f32 %v3325_v30, %v542_v37  ;;  %v3327_v16 = vpop.f32.mrb[11].mxu1 }
 0x2d7   :  { %4952 = vtanh.f32 %v4745_v40  ;;  %v4742_v46 = vadd.f32 %v3123_v44, %v538_v5  ;;  %v4748_v31 = vadd.f32 %v3327_v16, %v546_v32 }
 0x2d8   :  { %4954 = vtanh.f32 %v4740_v41 }
 0x2d9   :  { %4956 = vtanh.f32 %v4746_v42 }
 0x2da   :  { %4958 = vtanh.f32 %v4741_v43 }
 0x2db   :  { %4960 = vtanh.f32 %v4747_v9  ;;  %v3127_v39 = vpop.f32.mrb[12].mxu0  ;;  %v3331_v48 = vpop.f32.mrb[12].mxu1 }
 0x2dc   :  { %4962 = vtanh.f32 %v4742_v46  ;;  %v3129_v49 = vpop.f32.mrb[13].mxu0  ;;  %v3333_v51 = vpop.f32.mrb[13].mxu1  ;;  %v4743_v55 = vadd.f32 %v3127_v39, %v534_v61  ;;  %v4749_v60 = vadd.f32 %v3331_v48, %v542_v37  ;;  %v4090_v48 = vand.u32 127, %v515_v29 }
 0x2dd   :  { %4964 = vtanh.f32 %v4748_v31  ;;  %v4744_v50 = vadd.f32 %v3129_v49, %v538_v5  ;;  %v3131_v56 = vpop.f32.mrb[14].mxu0  ;;  %v4750_v52 = vadd.f32 %v3333_v51, %v546_v32  ;;  %v3335_v53 = vpop.f32.mrb[14].mxu1 }
 0x2de   :  { %v3132_v54 = vpop.f32.mrb[15].mxu0  ;;  %v3336_v57 = vpop.f32.mrb[15].mxu1  ;;  %vm4091_vm1 = vcmp.lt.s32.totalorder %v4090_v48, 10 }
 0x2df   :  { %4966 = vtanh.f32 %v4744_v50 }
 0x2e0   :  { %v4951_v59 = vpop.eup %4950  ;;  %4968 = vtanh.f32 %v4750_v52 }
 0x2e1   :  { %v4953_v10 = vpop.eup %4952  ;;  %4970 = vtanh.f32 %v4743_v55 }
 0x2e2   :  { %v4955_v62 = vpop.eup %4954  ;;  %4972 = vtanh.f32 %v4749_v60 }
 0x2e3   :  { %v4957_v2 = vpop.eup %4956 }
 0x2e4   :  { %v4959_v63 = vpop.eup %4958 }
 0x2e5   :  { %v4961_v0 = vpop.eup %4960  ;;  %v3366_v1 = vpack.c.bf16 %v4959_v63, %v4951_v59 }
 0x2e6   :  { %v4963_v3 = vpop.eup %4962  ;;  %v3368_v4 = vpack.c.bf16 %v4961_v0, %v4953_v10 }
 0x2e7   :  { %v4965_v6 = vpop.eup %4964  ;;  %v3367_v7 = vpack.c.bf16 %v4963_v3, %v4955_v62 }
 0x2e8   :  { %v3369_v8 = vpack.c.bf16 %v4965_v6, %v4957_v2 }
 0x2e9   :  { %4025 = vmatprep.mubr.bf16.mxu0 %v3367_v7  ;;  %v4967_v11 = vpop.eup %4966 }
 0x2ea   :  { %4073 = vmatprep.mubr.bf16.mxu1 %v3369_v8  ;;  %4026 = vmatmul.mubr.bf16.vlgmr.msra.gmra.mrb[24].mxu0 %v3366_v1  ;;  %v4969_v58 = vpop.eup %4968  ;;  %v3375_v12 = vpack.c.bf16 %v4967_v11, %v4967_v11 }
 0x2eb   :  { %4074 = vmatmul.mubr.bf16.vlgmr.msra.gmra.mrb[24].mxu1 %v3368_v4  ;;  %v3377_v14 = vpack.c.bf16 %v4969_v58, %v4969_v58  ;;  %v4971_v36 = vpop.eup %4970 }
 0x2ec   :  { %4033 = vmatprep.mubr.bf16.mxu0 %v3375_v12  ;;  %v4973_v13 = vpop.eup %4972  ;;  %v3374_v15 = vpack.c.bf16 %v4971_v36, %v4971_v36 }
 0x2ed   :  { %4081 = vmatprep.mubr.bf16.mxu1 %v3377_v14  ;;  %v3376_v17 = vpack.c.bf16 %v4973_v13, %v4973_v13 }
 0x2f2   :  { %4034 = vmatmul.mubr.bf16.gmra.mrb[28].mxu0 %v3374_v15 }
 0x2f3   :  { %4082 = vmatmul.mubr.bf16.gmra.mrb[28].mxu1 %v3376_v17  ;;  %v4631_v18 = vpop.f32.mrb[16].mxu0 }
 0x2f4   :  { %v4659_v19 = vpop.f32.mrb[16].mxu1  ;;  %v4632_v21 = vpop.f32.mrb[17].mxu0 }
 0x2f5   :  { %v4633_v24 = vadd.f32 %v4632_v21, %v4631_v18  ;;  %v4660_v22 = vpop.f32.mrb[17].mxu1  ;;  %v4634_v23 = vpop.f32.mrb[18].mxu0 }
 0x2f6   :  { %v4661_v25 = vadd.f32 %v4660_v22, %v4659_v19  ;;  %v4662_v26 = vpop.f32.mrb[18].mxu1  ;;  %v4635_v27 = vpop.f32.mrb[19].mxu0 }
 0x2f7   :  { %v3932_v28 = vadd.f32 %v4633_v24, %v4550_v20  ;;  %v4636_v61 = vadd.f32 %v4635_v27, %v4634_v23  ;;  %v4663_v37 = vpop.f32.mrb[19].mxu1 }
 0x2f8   :  { %v4664_v5 = vadd.f32 %v4663_v37, %v4662_v26 }
 0x2f9   :  { %v3980_v32 = vadd.f32 %v4661_v25, %v3932_v28  ;;  %v3935_v35 = vadd.f32 %v4636_v61, %v4550_v20 }
 0x2fb   :  { %v3983_v33 = vadd.f32 %v4664_v5, %v3935_v35  ;;  %v4637_v34 = vpop.f32.mrb[20].mxu0 }
 0x2fc   :  { %v4665_v38 = vpop.f32.mrb[20].mxu1  ;;  %v4638_v40 = vpop.f32.mrb[21].mxu0 }
 0x2fd   :  { %v4639_v41 = vadd.f32 %v4638_v40, %v4637_v34  ;;  %v4666_v47 = vpop.f32.mrb[21].mxu1  ;;  %v4640_v45 = vpop.f32.mrb[22].mxu0 }
 0x2fe   :  { %v4667_v42 = vadd.f32 %v4666_v47, %v4665_v38  ;;  %v4668_v43 = vpop.f32.mrb[22].mxu1  ;;  %v4641_v30 = vpop.f32.mrb[23].mxu0 }
 0x2ff   :  { %v3940_v44 = vadd.f32 %v4639_v41, %v4550_v20  ;;  %v4669_v9 = vpop.f32.mrb[23].mxu1 }
 0x301   :  { %v3988_v16 = vadd.f32 %v4667_v42, %v3940_v44 }
 0x3bd   :  { %v4687_v46 = vpop.f32.mrb[24].mxu0 }
 0x3be   :  { %v4715_v31 = vpop.f32.mrb[24].mxu1  ;;  %v4688_v39 = vpop.f32.mrb[25].mxu0 }
 0x3bf   :  { %v4689_v49 = vadd.f32 %v4688_v39, %v4687_v46  ;;  %v4716_v50 = vpop.f32.mrb[25].mxu1  ;;  %v4690_v51 = vpop.f32.mrb[26].mxu0 }
 0x3c0   :  { %v4717_v56 = vadd.f32 %v4716_v50, %v4715_v31  ;;  %v4718_v52 = vpop.f32.mrb[26].mxu1  ;;  %v4691_v53 = vpop.f32.mrb[27].mxu0 }
 0x3c1   :  { %v4028_v54 = vadd.f32 %v4689_v49, %v3980_v32  ;;  %v4692_v55 = vadd.f32 %v4691_v53, %v4690_v51  ;;  %v4719_v57 = vpop.f32.mrb[27].mxu1 }
 0x3c2   :  { %v4720_v59 = vadd.f32 %v4719_v57, %v4718_v52 }
 0x3c3   :  { %v4031_v60 = vadd.f32 %v4692_v55, %v3983_v33  ;;  %v4076_v10 = vadd.f32 %v4717_v56, %v4028_v54 }
 0x3c5   :  { %v4693_v62 = vpop.f32.mrb[28].mxu0  ;;  %v4092_v2 = vsel %vm4091_vm1, %v4076_v10, -1e+30  ;;  %v4079_v63 = vadd.f32 %v4720_v59, %v4031_v60 }
 0x3c6   :  { %v4721_v0 = vpop.f32.mrb[28].mxu1  ;;  %v4694_v1 = vpop.f32.mrb[29].mxu0  ;;  %4095 = vmax.xlane.f32.xlu0 %v4092_v2 }
 0x3c7   :  { %v4695_v29 = vadd.f32 %v4694_v1, %v4693_v62  ;;  %v4722_v3 = vpop.f32.mrb[29].mxu1  ;;  %v4696_v4 = vpop.f32.mrb[30].mxu0  ;;  %v4093_v12 = vsel %vm4091_vm1, %v4079_v63, -1e+30 }
 0x3c8   :  { %v4723_v6 = vadd.f32 %v4722_v3, %v4721_v0  ;;  %v4724_v7 = vpop.f32.mrb[30].mxu1  ;;  %v4697_v8 = vpop.f32.mrb[31].mxu0 }
 0x3c9   :  { %v4036_v11 = vadd.f32 %v4695_v29, %v3988_v16  ;;  %v4725_v58 = vpop.f32.mrb[31].mxu1 }
 0x3ca   :  { %4097 = vmax.xlane.f32.xlu0 %v4093_v12 }
 0x3cb   :  { %v4084_v14 = vadd.f32 %v4723_v6, %v4036_v11 }
 0x3cd   :  { %v4094_v36 = vsel %vm4091_vm1, %v4084_v14, -1e+30 }
 0x3ce   :  { %4099 = vmax.xlane.f32.xlu1 %v4094_v36 }
 0x453   :  { %v4096_v13 = vpop.xlane.xlu0 %4095 }
 0x454   :  { %v4101_v15 = vsub.f32 %v4092_v2, %v4096_v13 }
 0x456   :  { %v4104_v17 = vmul.f32 1.442695, %v4101_v15 }
 0x457   :  { %v4098_v18 = vpop.xlane.xlu0 %4097 }
 0x458   :  { %4974 = vpow2.f32 %v4104_v17  ;;  %v4102_v19 = vsub.f32 %v4093_v12, %v4098_v18 }
 0x45a   :  { %v4106_v20 = vmul.f32 1.442695, %v4102_v19 }
 0x45b   :  { %v4100_v21 = vpop.xlane.xlu1 %4099 }
 0x45c   :  { %4976 = vpow2.f32 %v4106_v20  ;;  %v4103_v24 = vsub.f32 %v4094_v36, %v4100_v21 }
 0x45e   :  { %v4108_v22 = vmul.f32 1.442695, %v4103_v24 }
 0x460   :  { %4978 = vpow2.f32 %v4108_v22 }
 0x462   :  { %v4975_v23 = vpop.eup %4974 }
 0x463   :  { %v4110_v25 = vsel %vm4091_vm1, %v4975_v23, 0.0 }
 0x464   :  { %4113 = vadd.xlane.f32.xlu1 %v4110_v25 }
 0x466   :  { %v4977_v26 = vpop.eup %4976 }
 0x467   :  { %v4111_v27 = vsel %vm4091_vm1, %v4977_v26, 0.0 }
 0x468   :  { %4115 = vadd.xlane.f32.xlu0 %v4111_v27 }
 0x46a   :  { %v4979_v28 = vpop.eup %4978 }
 0x46b   :  { %v4112_v61 = vsel %vm4091_vm1, %v4979_v28, 0.0 }
 0x46c   :  { %4117 = vadd.xlane.f32.xlu1 %v4112_v61 }
 0x4f1   :  { %v4114_v37 = vpop.xlane.xlu1 %4113 }
 0x4f2   :  { %4980 = vlog2.f32 %v4114_v37 }
 0x4f5   :  { %v4116_v5 = vpop.xlane.xlu0 %4115 }
 0x4f6   :  { %4982 = vlog2.f32 %v4116_v5 }
 0x4f9   :  { %v4118_v32 = vpop.xlane.xlu1 %4117 }
 0x4fa   :  { %4984 = vlog2.f32 %v4118_v32 }
 0x4fc   :  { %v4981_v35 = vpop.eup %4980 }
 0x4fd   :  { %v4120_v33 = vmul.f32 0.6931472, %v4981_v35 }
 0x4ff   :  { %v4125_v34 = vsub.f32 %v4101_v15, %v4120_v33 }
 0x500   :  { %v4983_v38 = vpop.eup %4982 }
 0x501   :  { %4128 = vst [vmem:[#allocation11] sm:$0xff] %v4125_v34  ;;  %v4122_v40 = vmul.f32 0.6931472, %v4983_v38 }
 0x503   :  { %v4126_v41 = vsub.f32 %v4102_v19, %v4122_v40 }
 0x504   :  { %v4985_v47 = vpop.eup %4984 }
 0x505   :  { %4129 = vst [vmem:[#allocation11 + $0x8] sm:$0xff] %v4126_v41  ;;  %v4124_v45 = vmul.f32 0.6931472, %v4985_v47 }
 0x507   :  { %v4127_v42 = vsub.f32 %v4103_v24, %v4124_v45 }
 0x509   :  { %4130 = vst [vmem:[#allocation11 + $0x10] sm:$0xff] %v4127_v42 }
 0x50a   :  { %5107 = shalt.err (!%p5104_p2)
}
 0x50b   :  { %s5108_s8 = scalar_lea.hbm %s5386_s5, 384 }
 0x50c   :  { %p5109_p3 = scmp.ne.s32.totalorder %s5386_s5, %s5108_s8  ;;  %p5112_p4 = scmp.lt.u32.totalorder %s5108_s8, %s5386_s5 }
 0x50e   :  { %p5114_p5 = pnand %p5112_p4, %p5109_p3 }
 0x510   :  { %5117 = shalt.err (!%p5114_p5)
}
 0x511   :  { %s5139_s13 = smov 128   ;;  %s5140_s14 = smov 8  }
 0x512   :  { %4142 = dma.vmem_to_hbm [thread:$0]  %s4137_s3, 384, %s5386_s5, [#allocation4], %s5139_s13, %s5139_s13, %s5140_s14  }
 0x513   :  { %5124 = dma.done.wait [#allocation4], 384  }
 0x514   :  { %5125 = vsyncadd [#allocation4], 4294966912 }
 0x515   :  { %4146 = vsyncpa [#allocation3], 1 }
 0x516   :  { %4147 = vsyncpa [#allocation6], 1 }
 0x517   :  { %4148 = vsyncpa [#allocation9], 1 }
 0x518   :  { %4149 = vsyncpa [#allocation4], 1 }

</bundles_post_ra>
